<compile_context>
chip_gen: v6e
topology: v6e:2x2x1
jax: 0.10.0
libtpu: 0.0.40
codegen_flags: <defaults>
</compile_context>

<pallas_src>
import math

import jax
import jax.numpy as jnp
from jax.experimental import pallas as pl
from jax.experimental.pallas import tpu as pltpu


def encoder_kernel(xw_ref, w1_ref, b1_ref, w2_ref, b2_ref, w3_ref, b3_ref,
                   wfc1_ref, bfc1_ref, wfc2_ref, bfc2_ref, out_ref):
    L, bt, kin = xw_ref.shape          # kin = 3*Cin (taps pre-stacked by wrapper)
    lp = L // 2                        # length after maxpool
    l3 = lp - 1                        # length after conv3 (k=2, no pad)
    c1 = w1_ref.shape[1]               # 32
    c2 = w2_ref.shape[2]               # 64
    c3 = w3_ref.shape[2]               # 32

    def leaky(h):
        return jnp.where(h > 0, h, 0.1 * h)

    # ---- conv1 (k=3,s=1,p=1): single GEMM, im2col done in the wrapper ---------
    xw = xw_ref[...].reshape(L * bt, kin)                       # row = l*bt + b
    h1 = leaky(jnp.dot(xw, w1_ref[...], preferred_element_type=jnp.float32)
               + b1_ref[...])                                   # (L*bt, 32)

    # ---- MaxPool1d (k=2,s=2): adjacent positions = adjacent (bt,32) blocks ----
    h1 = h1.reshape(lp, 2, bt, c1)                              # free (bt % 8 == 0)
    pooled = jnp.maximum(h1[:, 0, :, :], h1[:, 1, :, :])        # (lp, bt, 32)

    # ---- conv2 (k=3,s=1,p=1): 3 tap GEMMs on shifted leading-axis views -------
    zpad = jnp.zeros((1, bt, c1), jnp.float32)
    pp = jnp.concatenate([zpad, pooled, zpad], axis=0)          # (lp+2, bt, 32)
    a2 = jnp.dot(pp[0:lp].reshape(lp * bt, c1), w2_ref[0],
                 preferred_element_type=jnp.float32)
    a2 = a2 + jnp.dot(pp[1:lp + 1].reshape(lp * bt, c1), w2_ref[1],
                      preferred_element_type=jnp.float32)
    a2 = a2 + jnp.dot(pp[2:lp + 2].reshape(lp * bt, c1), w2_ref[2],
                      preferred_element_type=jnp.float32)
    h2 = leaky(a2 + b2_ref[...]).reshape(lp, bt, c2)            # (lp, bt, 64)

    # ---- conv3 (k=2,s=1,p=0): 2 tap GEMMs, no padding needed ------------------
    a3 = jnp.dot(h2[0:l3].reshape(l3 * bt, c2), w3_ref[0],
                 preferred_element_type=jnp.float32)
    a3 = a3 + jnp.dot(h2[1:lp].reshape(l3 * bt, c2), w3_ref[1],
                      preferred_element_type=jnp.float32)
    h3 = leaky(a3 + b3_ref[...]).reshape(l3, bt, c3)            # (l3, bt, 32)

    # ---- dropout: identity (inference) -----------------------------------------
    # ---- fc1: per-position GEMM accumulation (replaces the strided flatten) ---
    acc = bfc1_ref[...] + jnp.dot(h3[0], wfc1_ref[0],
                                  preferred_element_type=jnp.float32)
    for l in range(1, l3):
        acc = acc + jnp.dot(h3[l], wfc1_ref[l],
                            preferred_element_type=jnp.float32)
    zfc = jax.nn.sigmoid(acc)                                   # (bt, h1dim)

    # ---- fc2: output columns zero-padded to a lane-dense width ----------------
    out_ref[...] = (jnp.dot(zfc, wfc2_ref[...],
                            preferred_element_type=jnp.float32) + bfc2_ref[...])


def prepare_params(params):
    """One-time weight permutation / tap splitting / output-lane padding."""
    c_in = params["w1"].shape[1]
    h1dim, flat = params["wfc1"].shape
    l3 = flat // 32
    latent_dim = params["wfc2"].shape[0]
    out_cols = max(128, ((latent_dim + 127) // 128) * 128)      # lane-dense store

    def f32(a):
        return jnp.asarray(a, jnp.float32)

    # Conv weights (Cout, Cin, K) -> per-tap (K, Cin, Cout); conv1's taps are
    # additionally flattened to (K*Cin, Cout) to pair with the wrapper im2col.
    w1c = jnp.transpose(f32(params["w1"]), (2, 1, 0)).reshape(3 * c_in, 32)
    w2p = jnp.transpose(f32(params["w2"]), (2, 1, 0))           # (3, 32, 64)
    w3p = jnp.transpose(f32(params["w3"]), (2, 1, 0))           # (2, 64, 32)
    # PyTorch flatten is channel-major (flat[c*l3 + l]); split into per-position
    # (32, h1dim) blocks for the in-kernel accumulation.
    wfc1p = jnp.transpose(f32(params["wfc1"]).reshape(h1dim, 32, l3), (2, 1, 0))
    # fc2: transpose + zero-pad the output columns to a lane-dense width.
    wfc2p = jnp.zeros((h1dim, out_cols), jnp.float32)
    wfc2p = wfc2p.at[:, :latent_dim].set(f32(params["wfc2"]).T)
    bfc2p = jnp.zeros((1, out_cols), jnp.float32)
    bfc2p = bfc2p.at[:, :latent_dim].set(f32(params["bfc2"]).reshape(1, -1))
    return {
        "w1c": w1c, "b1": f32(params["b1"]).reshape(1, -1),
        "w2p": w2p, "b2": f32(params["b2"]).reshape(1, -1),
        "w3p": w3p, "b3": f32(params["b3"]).reshape(1, -1),
        "wfc1p": wfc1p, "bfc1": f32(params["bfc1"]).reshape(1, -1),
        "wfc2p": wfc2p, "bfc2": bfc2p,
        "latent_dim": latent_dim,
    }


def encoder_forward(x_ncl, prep, *, max_batch_per_step=256,
                    vmem_limit_bytes=48 * 1024 * 1024):
    """x_ncl: (B, C_in, L) float32 in PyTorch NCL layout. prep: prepare_params(...)."""
    B, c_in, L = x_ncl.shape
    assert L % 2 == 0, "maxpool stride-2 path assumes even L"
    latent_dim = prep["latent_dim"]
    out_cols = prep["bfc2"].shape[1]

    # bt: multiple of 8, >= 2 grid steps so both v7x TensorCores get work.
    # Sweep max_batch_per_step (256/512/...) for large B; re-derive vs VMEM on v7x.
    max_bt = max(8, (max_batch_per_step // 8) * 8)
    bt = min(max_bt, max(8, ((pl.cdiv(B, 2) + 7) // 8) * 8))
    b_pad = max(pl.cdiv(B, bt) * bt, 2 * bt)

    # One-time layout glue in XLA: NCL -> length-major (L, B, Cin), conv1 zero
    # padding + im2col tap stacking on the lane axis, batch padding.
    x_lbc = jnp.transpose(x_ncl, (2, 0, 1)).astype(jnp.float32)       # (L, B, Cin)
    xp = jnp.pad(x_lbc, ((1, 1), (0, 0), (0, 0)))                     # (L+2, B, Cin)
    xw = jnp.concatenate([xp[k:k + L] for k in range(3)], axis=-1)    # (L, B, 3Cin)
    xw = jnp.pad(xw, ((0, 0), (0, b_pad - B), (0, 0)))                # (L, B_pad, 3Cin)

    weights = [prep["w1c"], prep["b1"], prep["w2p"], prep["b2"],
               prep["w3p"], prep["b3"], prep["wfc1p"], prep["bfc1"],
               prep["wfc2p"], prep["bfc2"]]

    def whole(arr):
        nd = arr.ndim
        return pl.BlockSpec(arr.shape, lambda i, _nd=nd: (0,) * _nd)

    out = pl.pallas_call(
        encoder_kernel,
        out_shape=jax.ShapeDtypeStruct((b_pad, out_cols), jnp.float32),
        grid_spec=pltpu.PrefetchScalarGridSpec(
            num_scalar_prefetch=0,
            grid=(b_pad // bt,),
            in_specs=[pl.BlockSpec((L, bt, 3 * c_in), lambda i: (0, i, 0))]
                     + [whole(w) for w in weights],
            out_specs=pl.BlockSpec((bt, out_cols), lambda i: (i, 0)),
        ),
        compiler_params=pltpu.CompilerParams(
            dimension_semantics=("parallel",),
            vmem_limit_bytes=vmem_limit_bytes),
    )(xw, *weights)
    return out[:B, :latent_dim]


def reference_forward(x, params):
    """Pure-JAX reference with PyTorch NCL semantics."""
    def conv1d(h, w, b, pad):
        out = jax.lax.conv_general_dilated(
            h, w, window_strides=(1,), padding=[(pad, pad)],
            dimension_numbers=("NCH", "OIH", "NCH"))
        return out + b[None, :, None]

    def leaky(h):
        return jnp.where(h > 0, h, 0.1 * h)

    h = leaky(conv1d(x, params["w1"], params["b1"], 1))
    B, C, L = h.shape
    h = jnp.max(h[:, :, :(L // 2) * 2].reshape(B, C, L // 2, 2), axis=-1)
    h = leaky(conv1d(h, params["w2"], params["b2"], 1))
    h = leaky(conv1d(h, params["w3"], params["b3"], 0))
    flat = h.reshape(B, -1)                        # channel-major, like .view
    z = jax.nn.sigmoid(flat @ params["wfc1"].T + params["bfc1"])
    return z @ params["wfc2"].T + params["bfc2"]


if __name__ == "__main__":
    # Small shapes consistent with the module: batch=2, channels=4, length=16.
    B, c_in, L, latent_dim = 2, 4, 16, 8
    lp = L // 2
    l5 = lp - 1
    flat = 32 * l5          # 224
    h1dim = flat // 2       # 112

    key = jax.random.PRNGKey(0)
    ks = jax.random.split(key, 11)

    def uinit(k, shape, fan_in):
        bound = 1.0 / math.sqrt(fan_in)
        return jax.random.uniform(k, shape, jnp.float32, -bound, bound)

    params = {
        "w1": uinit(ks[0], (32, c_in, 3), c_in * 3),
        "b1": uinit(ks[1], (32,), c_in * 3),
        "w2": uinit(ks[2], (64, 32, 3), 32 * 3),
        "b2": uinit(ks[3], (64,), 32 * 3),
        "w3": uinit(ks[4], (32, 64, 2), 64 * 2),
        "b3": uinit(ks[5], (32,), 64 * 2),
        "wfc1": uinit(ks[6], (h1dim, flat), flat),
        "bfc1": uinit(ks[7], (h1dim,), flat),
        "wfc2": uinit(ks[8], (latent_dim, h1dim), h1dim),
        "bfc2": uinit(ks[9], (latent_dim,), h1dim),
    }
    x = jax.random.normal(ks[10], (B, c_in, L), jnp.float32)

    prep = prepare_params(params)                     # one-time weight permutation
    out = jax.block_until_ready(encoder_forward(x, prep))
    ref = jax.block_until_ready(reference_forward(x, params))

    assert out.shape == (B, latent_dim)
    assert jnp.allclose(out, ref, atol=1e-2, rtol=1e-2), (out, ref)
    print("KERNEL_OK")
</pallas_src>

<mosaic_0001>
module attributes {stable_mosaic.version = 11 : i64} {
  func.func @encoder_kernel(%arg0: i32, %arg1: memref<16x8x12xf32, #tpu.memory_space<vmem>>, %arg2: memref<12x32xf32, #tpu.memory_space<vmem>>, %arg3: memref<1x32xf32, #tpu.memory_space<vmem>>, %arg4: memref<3x32x64xf32, #tpu.memory_space<vmem>>, %arg5: memref<1x64xf32, #tpu.memory_space<vmem>>, %arg6: memref<2x64x32xf32, #tpu.memory_space<vmem>>, %arg7: memref<1x32xf32, #tpu.memory_space<vmem>>, %arg8: memref<7x32x112xf32, #tpu.memory_space<vmem>>, %arg9: memref<1x112xf32, #tpu.memory_space<vmem>>, %arg10: memref<112x128xf32, #tpu.memory_space<vmem>>, %arg11: memref<1x128xf32, #tpu.memory_space<vmem>>, %arg12: memref<8x128xf32, #tpu.memory_space<vmem>>) attributes {dimension_semantics = [#tpu.dimension_semantics<parallel>], iteration_bounds = array<i64: 2>, scalar_prefetch = 0 : i64, scratch_operands = 0 : i64, tpu.core_type = #tpu.core_type<tc>, window_params = [{transform_indices = @transform_0, window_bounds = array<i64: 16, 8, 12>}, {pipeline_mode = #tpu.pipeline_mode<synchronous>, transform_indices = @transform_1, window_bounds = array<i64: 12, 32>}, {pipeline_mode = #tpu.pipeline_mode<synchronous>, transform_indices = @transform_2, window_bounds = array<i64: 1, 32>}, {pipeline_mode = #tpu.pipeline_mode<synchronous>, transform_indices = @transform_3, window_bounds = array<i64: 3, 32, 64>}, {pipeline_mode = #tpu.pipeline_mode<synchronous>, transform_indices = @transform_4, window_bounds = array<i64: 1, 64>}, {pipeline_mode = #tpu.pipeline_mode<synchronous>, transform_indices = @transform_5, window_bounds = array<i64: 2, 64, 32>}, {pipeline_mode = #tpu.pipeline_mode<synchronous>, transform_indices = @transform_6, window_bounds = array<i64: 1, 32>}, {pipeline_mode = #tpu.pipeline_mode<synchronous>, transform_indices = @transform_7, window_bounds = array<i64: 7, 32, 112>}, {pipeline_mode = #tpu.pipeline_mode<synchronous>, transform_indices = @transform_8, window_bounds = array<i64: 1, 112>}, {pipeline_mode = #tpu.pipeline_mode<synchronous>, transform_indices = @transform_9, window_bounds = array<i64: 112, 128>}, {pipeline_mode = #tpu.pipeline_mode<synchronous>, transform_indices = @transform_10, window_bounds = array<i64: 1, 128>}, {transform_indices = @transform_11, window_bounds = array<i64: 8, 128>}]} {
    %c0 = arith.constant 0 : index
    %c0_0 = arith.constant 0 : index
    %c0_1 = arith.constant 0 : index
    %0 = vector.load %arg1[%c0, %c0_0, %c0_1] : memref<16x8x12xf32, #tpu.memory_space<vmem>>, vector<16x8x12xf32>
    %1 = vector.shape_cast %0 : vector<16x8x12xf32> to vector<128x12xf32>
    %c0_2 = arith.constant 0 : index
    %c0_3 = arith.constant 0 : index
    %2 = vector.load %arg2[%c0_2, %c0_3] : memref<12x32xf32, #tpu.memory_space<vmem>>, vector<12x32xf32>
    %cst = arith.constant dense<0.000000e+00> : vector<128x32xf32>
    %3 = tpu.matmul %1, %2, %cst {dimension_numbers = #tpu.dot_dimension_numbers<[1], [0], [0], [1], [0, 0, 1, 1], [], []>} : vector<128x12xf32>, vector<12x32xf32>, vector<128x32xf32> -> vector<128x32xf32>
    %c0_4 = arith.constant 0 : index
    %c0_5 = arith.constant 0 : index
    %4 = vector.load %arg3[%c0_4, %c0_5] : memref<1x32xf32, #tpu.memory_space<vmem>>, vector<1x32xf32>
    %5 = vector.broadcast %4 : vector<1x32xf32> to vector<128x32xf32>
    %6 = arith.addf %3, %5 : vector<128x32xf32>
    %cst_6 = arith.constant 0.000000e+00 : f32
    %7 = vector.broadcast %cst_6 : f32 to vector<128x32xf32>
    %8 = arith.cmpf ogt, %6, %7 : vector<128x32xf32>
    %cst_7 = arith.constant 1.000000e-01 : f32
    %9 = vector.broadcast %cst_7 : f32 to vector<128x32xf32>
    %10 = arith.mulf %9, %6 : vector<128x32xf32>
    %11 = arith.select %8, %6, %10 : vector<128x32xi1>, vector<128x32xf32>
    %12 = vector.shape_cast %11 : vector<128x32xf32> to vector<8x2x8x32xf32>
    %13 = vector.extract_strided_slice %12 {offsets = [0, 0, 0, 0], sizes = [8, 1, 8, 32], strides = [1, 1, 1, 1]} : vector<8x2x8x32xf32> to vector<8x1x8x32xf32>
    %14 = vector.shape_cast %13 : vector<8x1x8x32xf32> to vector<8x8x32xf32>
    %15 = vector.extract_strided_slice %12 {offsets = [0, 1, 0, 0], sizes = [8, 1, 8, 32], strides = [1, 1, 1, 1]} : vector<8x2x8x32xf32> to vector<8x1x8x32xf32>
    %16 = vector.shape_cast %15 : vector<8x1x8x32xf32> to vector<8x8x32xf32>
    %17 = arith.maximumf %14, %16 : vector<8x8x32xf32>
    %cst_8 = arith.constant 0.000000e+00 : f32
    %18 = vector.broadcast %cst_8 : f32 to vector<1x8x32xf32>
    %19 = tpu.concatenate %18, %17, %18 in 0 : vector<1x8x32xf32>, vector<8x8x32xf32>, vector<1x8x32xf32> -> vector<10x8x32xf32>
    %20 = vector.extract_strided_slice %19 {offsets = [0, 0, 0], sizes = [8, 8, 32], strides = [1, 1, 1]} : vector<10x8x32xf32> to vector<8x8x32xf32>
    %21 = vector.shape_cast %20 : vector<8x8x32xf32> to vector<64x32xf32>
    %c0_9 = arith.constant 0 : index
    %c0_10 = arith.constant 0 : index
    %c0_11 = arith.constant 0 : index
    %22 = vector.load %arg4[%c0_9, %c0_10, %c0_11] : memref<3x32x64xf32, #tpu.memory_space<vmem>>, vector<1x32x64xf32>
    %23 = vector.shape_cast %22 : vector<1x32x64xf32> to vector<32x64xf32>
    %cst_12 = arith.constant dense<0.000000e+00> : vector<64x64xf32>
    %24 = tpu.matmul %21, %23, %cst_12 {dimension_numbers = #tpu.dot_dimension_numbers<[1], [0], [0], [1], [0, 0, 1, 1], [], []>} : vector<64x32xf32>, vector<32x64xf32>, vector<64x64xf32> -> vector<64x64xf32>
    %25 = vector.extract_strided_slice %19 {offsets = [1, 0, 0], sizes = [8, 8, 32], strides = [1, 1, 1]} : vector<10x8x32xf32> to vector<8x8x32xf32>
    %26 = vector.shape_cast %25 : vector<8x8x32xf32> to vector<64x32xf32>
    %c1 = arith.constant 1 : index
    %c0_13 = arith.constant 0 : index
    %c0_14 = arith.constant 0 : index
    %27 = vector.load %arg4[%c1, %c0_13, %c0_14] : memref<3x32x64xf32, #tpu.memory_space<vmem>>, vector<1x32x64xf32>
    %28 = vector.shape_cast %27 : vector<1x32x64xf32> to vector<32x64xf32>
    %cst_15 = arith.constant dense<0.000000e+00> : vector<64x64xf32>
    %29 = tpu.matmul %26, %28, %cst_15 {dimension_numbers = #tpu.dot_dimension_numbers<[1], [0], [0], [1], [0, 0, 1, 1], [], []>} : vector<64x32xf32>, vector<32x64xf32>, vector<64x64xf32> -> vector<64x64xf32>
    %30 = arith.addf %24, %29 : vector<64x64xf32>
    %31 = vector.extract_strided_slice %19 {offsets = [2, 0, 0], sizes = [8, 8, 32], strides = [1, 1, 1]} : vector<10x8x32xf32> to vector<8x8x32xf32>
    %32 = vector.shape_cast %31 : vector<8x8x32xf32> to vector<64x32xf32>
    %c2 = arith.constant 2 : index
    %c0_16 = arith.constant 0 : index
    %c0_17 = arith.constant 0 : index
    %33 = vector.load %arg4[%c2, %c0_16, %c0_17] : memref<3x32x64xf32, #tpu.memory_space<vmem>>, vector<1x32x64xf32>
    %34 = vector.shape_cast %33 : vector<1x32x64xf32> to vector<32x64xf32>
    %cst_18 = arith.constant dense<0.000000e+00> : vector<64x64xf32>
    %35 = tpu.matmul %32, %34, %cst_18 {dimension_numbers = #tpu.dot_dimension_numbers<[1], [0], [0], [1], [0, 0, 1, 1], [], []>} : vector<64x32xf32>, vector<32x64xf32>, vector<64x64xf32> -> vector<64x64xf32>
    %36 = arith.addf %30, %35 : vector<64x64xf32>
    %c0_19 = arith.constant 0 : index
    %c0_20 = arith.constant 0 : index
    %37 = vector.load %arg5[%c0_19, %c0_20] : memref<1x64xf32, #tpu.memory_space<vmem>>, vector<1x64xf32>
    %38 = vector.broadcast %37 : vector<1x64xf32> to vector<64x64xf32>
    %39 = arith.addf %36, %38 : vector<64x64xf32>
    %cst_21 = arith.constant 0.000000e+00 : f32
    %40 = vector.broadcast %cst_21 : f32 to vector<64x64xf32>
    %41 = arith.cmpf ogt, %39, %40 : vector<64x64xf32>
    %cst_22 = arith.constant 1.000000e-01 : f32
    %42 = vector.broadcast %cst_22 : f32 to vector<64x64xf32>
    %43 = arith.mulf %42, %39 : vector<64x64xf32>
    %44 = arith.select %41, %39, %43 : vector<64x64xi1>, vector<64x64xf32>
    %45 = vector.shape_cast %44 : vector<64x64xf32> to vector<8x8x64xf32>
    %46 = vector.extract_strided_slice %45 {offsets = [0, 0, 0], sizes = [7, 8, 64], strides = [1, 1, 1]} : vector<8x8x64xf32> to vector<7x8x64xf32>
    %47 = vector.shape_cast %46 : vector<7x8x64xf32> to vector<56x64xf32>
    %c0_23 = arith.constant 0 : index
    %c0_24 = arith.constant 0 : index
    %c0_25 = arith.constant 0 : index
    %48 = vector.load %arg6[%c0_23, %c0_24, %c0_25] : memref<2x64x32xf32, #tpu.memory_space<vmem>>, vector<1x64x32xf32>
    %49 = vector.shape_cast %48 : vector<1x64x32xf32> to vector<64x32xf32>
    %cst_26 = arith.constant dense<0.000000e+00> : vector<56x32xf32>
    %50 = tpu.matmul %47, %49, %cst_26 {dimension_numbers = #tpu.dot_dimension_numbers<[1], [0], [0], [1], [0, 0, 1, 1], [], []>} : vector<56x64xf32>, vector<64x32xf32>, vector<56x32xf32> -> vector<56x32xf32>
    %51 = vector.extract_strided_slice %45 {offsets = [1, 0, 0], sizes = [7, 8, 64], strides = [1, 1, 1]} : vector<8x8x64xf32> to vector<7x8x64xf32>
    %52 = vector.shape_cast %51 : vector<7x8x64xf32> to vector<56x64xf32>
    %c1_27 = arith.constant 1 : index
    %c0_28 = arith.constant 0 : index
    %c0_29 = arith.constant 0 : index
    %53 = vector.load %arg6[%c1_27, %c0_28, %c0_29] : memref<2x64x32xf32, #tpu.memory_space<vmem>>, vector<1x64x32xf32>
    %54 = vector.shape_cast %53 : vector<1x64x32xf32> to vector<64x32xf32>
    %cst_30 = arith.constant dense<0.000000e+00> : vector<56x32xf32>
    %55 = tpu.matmul %52, %54, %cst_30 {dimension_numbers = #tpu.dot_dimension_numbers<[1], [0], [0], [1], [0, 0, 1, 1], [], []>} : vector<56x64xf32>, vector<64x32xf32>, vector<56x32xf32> -> vector<56x32xf32>
    %56 = arith.addf %50, %55 : vector<56x32xf32>
    %c0_31 = arith.constant 0 : index
    %c0_32 = arith.constant 0 : index
    %57 = vector.load %arg7[%c0_31, %c0_32] : memref<1x32xf32, #tpu.memory_space<vmem>>, vector<1x32xf32>
    %58 = vector.broadcast %57 : vector<1x32xf32> to vector<56x32xf32>
    %59 = arith.addf %56, %58 : vector<56x32xf32>
    %cst_33 = arith.constant 0.000000e+00 : f32
    %60 = vector.broadcast %cst_33 : f32 to vector<56x32xf32>
    %61 = arith.cmpf ogt, %59, %60 : vector<56x32xf32>
    %cst_34 = arith.constant 1.000000e-01 : f32
    %62 = vector.broadcast %cst_34 : f32 to vector<56x32xf32>
    %63 = arith.mulf %62, %59 : vector<56x32xf32>
    %64 = arith.select %61, %59, %63 : vector<56x32xi1>, vector<56x32xf32>
    %65 = vector.shape_cast %64 : vector<56x32xf32> to vector<7x8x32xf32>
    %c0_35 = arith.constant 0 : index
    %c0_36 = arith.constant 0 : index
    %66 = vector.load %arg9[%c0_35, %c0_36] : memref<1x112xf32, #tpu.memory_space<vmem>>, vector<1x112xf32>
    %67 = vector.extract_strided_slice %65 {offsets = [0, 0, 0], sizes = [1, 8, 32], strides = [1, 1, 1]} : vector<7x8x32xf32> to vector<1x8x32xf32>
    %68 = vector.shape_cast %67 : vector<1x8x32xf32> to vector<8x32xf32>
    %c0_37 = arith.constant 0 : index
    %c0_38 = arith.constant 0 : index
    %c0_39 = arith.constant 0 : index
    %69 = vector.load %arg8[%c0_37, %c0_38, %c0_39] : memref<7x32x112xf32, #tpu.memory_space<vmem>>, vector<1x32x112xf32>
    %70 = vector.shape_cast %69 : vector<1x32x112xf32> to vector<32x112xf32>
    %cst_40 = arith.constant dense<0.000000e+00> : vector<8x112xf32>
    %71 = tpu.matmul %68, %70, %cst_40 {dimension_numbers = #tpu.dot_dimension_numbers<[1], [0], [0], [1], [0, 0, 1, 1], [], []>} : vector<8x32xf32>, vector<32x112xf32>, vector<8x112xf32> -> vector<8x112xf32>
    %72 = vector.broadcast %66 : vector<1x112xf32> to vector<8x112xf32>
    %73 = arith.addf %72, %71 : vector<8x112xf32>
    %74 = vector.extract_strided_slice %65 {offsets = [1, 0, 0], sizes = [1, 8, 32], strides = [1, 1, 1]} : vector<7x8x32xf32> to vector<1x8x32xf32>
    %75 = vector.shape_cast %74 : vector<1x8x32xf32> to vector<8x32xf32>
    %c1_41 = arith.constant 1 : index
    %c0_42 = arith.constant 0 : index
    %c0_43 = arith.constant 0 : index
    %76 = vector.load %arg8[%c1_41, %c0_42, %c0_43] : memref<7x32x112xf32, #tpu.memory_space<vmem>>, vector<1x32x112xf32>
    %77 = vector.shape_cast %76 : vector<1x32x112xf32> to vector<32x112xf32>
    %cst_44 = arith.constant dense<0.000000e+00> : vector<8x112xf32>
    %78 = tpu.matmul %75, %77, %cst_44 {dimension_numbers = #tpu.dot_dimension_numbers<[1], [0], [0], [1], [0, 0, 1, 1], [], []>} : vector<8x32xf32>, vector<32x112xf32>, vector<8x112xf32> -> vector<8x112xf32>
    %79 = arith.addf %73, %78 : vector<8x112xf32>
    %80 = vector.extract_strided_slice %65 {offsets = [2, 0, 0], sizes = [1, 8, 32], strides = [1, 1, 1]} : vector<7x8x32xf32> to vector<1x8x32xf32>
    %81 = vector.shape_cast %80 : vector<1x8x32xf32> to vector<8x32xf32>
    %c2_45 = arith.constant 2 : index
    %c0_46 = arith.constant 0 : index
    %c0_47 = arith.constant 0 : index
    %82 = vector.load %arg8[%c2_45, %c0_46, %c0_47] : memref<7x32x112xf32, #tpu.memory_space<vmem>>, vector<1x32x112xf32>
    %83 = vector.shape_cast %82 : vector<1x32x112xf32> to vector<32x112xf32>
    %cst_48 = arith.constant dense<0.000000e+00> : vector<8x112xf32>
    %84 = tpu.matmul %81, %83, %cst_48 {dimension_numbers = #tpu.dot_dimension_numbers<[1], [0], [0], [1], [0, 0, 1, 1], [], []>} : vector<8x32xf32>, vector<32x112xf32>, vector<8x112xf32> -> vector<8x112xf32>
    %85 = arith.addf %79, %84 : vector<8x112xf32>
    %86 = vector.extract_strided_slice %65 {offsets = [3, 0, 0], sizes = [1, 8, 32], strides = [1, 1, 1]} : vector<7x8x32xf32> to vector<1x8x32xf32>
    %87 = vector.shape_cast %86 : vector<1x8x32xf32> to vector<8x32xf32>
    %c3 = arith.constant 3 : index
    %c0_49 = arith.constant 0 : index
    %c0_50 = arith.constant 0 : index
    %88 = vector.load %arg8[%c3, %c0_49, %c0_50] : memref<7x32x112xf32, #tpu.memory_space<vmem>>, vector<1x32x112xf32>
    %89 = vector.shape_cast %88 : vector<1x32x112xf32> to vector<32x112xf32>
    %cst_51 = arith.constant dense<0.000000e+00> : vector<8x112xf32>
    %90 = tpu.matmul %87, %89, %cst_51 {dimension_numbers = #tpu.dot_dimension_numbers<[1], [0], [0], [1], [0, 0, 1, 1], [], []>} : vector<8x32xf32>, vector<32x112xf32>, vector<8x112xf32> -> vector<8x112xf32>
    %91 = arith.addf %85, %90 : vector<8x112xf32>
    %92 = vector.extract_strided_slice %65 {offsets = [4, 0, 0], sizes = [1, 8, 32], strides = [1, 1, 1]} : vector<7x8x32xf32> to vector<1x8x32xf32>
    %93 = vector.shape_cast %92 : vector<1x8x32xf32> to vector<8x32xf32>
    %c4 = arith.constant 4 : index
    %c0_52 = arith.constant 0 : index
    %c0_53 = arith.constant 0 : index
    %94 = vector.load %arg8[%c4, %c0_52, %c0_53] : memref<7x32x112xf32, #tpu.memory_space<vmem>>, vector<1x32x112xf32>
    %95 = vector.shape_cast %94 : vector<1x32x112xf32> to vector<32x112xf32>
    %cst_54 = arith.constant dense<0.000000e+00> : vector<8x112xf32>
    %96 = tpu.matmul %93, %95, %cst_54 {dimension_numbers = #tpu.dot_dimension_numbers<[1], [0], [0], [1], [0, 0, 1, 1], [], []>} : vector<8x32xf32>, vector<32x112xf32>, vector<8x112xf32> -> vector<8x112xf32>
    %97 = arith.addf %91, %96 : vector<8x112xf32>
    %98 = vector.extract_strided_slice %65 {offsets = [5, 0, 0], sizes = [1, 8, 32], strides = [1, 1, 1]} : vector<7x8x32xf32> to vector<1x8x32xf32>
    %99 = vector.shape_cast %98 : vector<1x8x32xf32> to vector<8x32xf32>
    %c5 = arith.constant 5 : index
    %c0_55 = arith.constant 0 : index
    %c0_56 = arith.constant 0 : index
    %100 = vector.load %arg8[%c5, %c0_55, %c0_56] : memref<7x32x112xf32, #tpu.memory_space<vmem>>, vector<1x32x112xf32>
    %101 = vector.shape_cast %100 : vector<1x32x112xf32> to vector<32x112xf32>
    %cst_57 = arith.constant dense<0.000000e+00> : vector<8x112xf32>
    %102 = tpu.matmul %99, %101, %cst_57 {dimension_numbers = #tpu.dot_dimension_numbers<[1], [0], [0], [1], [0, 0, 1, 1], [], []>} : vector<8x32xf32>, vector<32x112xf32>, vector<8x112xf32> -> vector<8x112xf32>
    %103 = arith.addf %97, %102 : vector<8x112xf32>
    %104 = vector.extract_strided_slice %65 {offsets = [6, 0, 0], sizes = [1, 8, 32], strides = [1, 1, 1]} : vector<7x8x32xf32> to vector<1x8x32xf32>
    %105 = vector.shape_cast %104 : vector<1x8x32xf32> to vector<8x32xf32>
    %c6 = arith.constant 6 : index
    %c0_58 = arith.constant 0 : index
    %c0_59 = arith.constant 0 : index
    %106 = vector.load %arg8[%c6, %c0_58, %c0_59] : memref<7x32x112xf32, #tpu.memory_space<vmem>>, vector<1x32x112xf32>
    %107 = vector.shape_cast %106 : vector<1x32x112xf32> to vector<32x112xf32>
    %cst_60 = arith.constant dense<0.000000e+00> : vector<8x112xf32>
    %108 = tpu.matmul %105, %107, %cst_60 {dimension_numbers = #tpu.dot_dimension_numbers<[1], [0], [0], [1], [0, 0, 1, 1], [], []>} : vector<8x32xf32>, vector<32x112xf32>, vector<8x112xf32> -> vector<8x112xf32>
    %109 = arith.addf %103, %108 : vector<8x112xf32>
    %110 = arith.negf %109 : vector<8x112xf32>
    %111 = math.exp %110 : vector<8x112xf32>
    %cst_61 = arith.constant 1.000000e+00 : f32
    %112 = vector.broadcast %cst_61 : f32 to vector<8x112xf32>
    %113 = arith.addf %112, %111 : vector<8x112xf32>
    %114 = arith.divf %112, %113 : vector<8x112xf32>
    %c0_62 = arith.constant 0 : index
    %c0_63 = arith.constant 0 : index
    %115 = vector.load %arg10[%c0_62, %c0_63] : memref<112x128xf32, #tpu.memory_space<vmem>>, vector<112x128xf32>
    %cst_64 = arith.constant dense<0.000000e+00> : vector<8x128xf32>
    %116 = tpu.matmul %114, %115, %cst_64 {dimension_numbers = #tpu.dot_dimension_numbers<[1], [0], [0], [1], [0, 0, 1, 1], [], []>} : vector<8x112xf32>, vector<112x128xf32>, vector<8x128xf32> -> vector<8x128xf32>
    %c0_65 = arith.constant 0 : index
    %c0_66 = arith.constant 0 : index
    %117 = vector.load %arg11[%c0_65, %c0_66] : memref<1x128xf32, #tpu.memory_space<vmem>>, vector<1x128xf32>
    %118 = vector.broadcast %117 : vector<1x128xf32> to vector<8x128xf32>
    %119 = arith.addf %116, %118 : vector<8x128xf32>
    %c0_67 = arith.constant 0 : index
    %c0_68 = arith.constant 0 : index
    %120 = vector.load %arg12[%c0_67, %c0_68] : memref<8x128xf32, #tpu.memory_space<vmem>>, vector<8x128xf32>
    tpu.vector_store %arg12[%c0_67, %c0_68], %119 {strides = array<i32>} : memref<8x128xf32, #tpu.memory_space<vmem>>, vector<8x128xf32>,
    return
  }
  func.func @transform_0(%arg0: i32) -> (i32, i32, i32) {
    %c0_i32 = arith.constant 0 : i32
    %c0_i32_0 = arith.constant 0 : i32
    %c0_i32_1 = arith.constant 0 : i32
    return %c0_i32, %arg0, %c0_i32_0 : i32, i32, i32
  }
  func.func @transform_1(%arg0: i32) -> (i32, i32) {
    %c0_i32 = arith.constant 0 : i32
    %c0_i32_0 = arith.constant 0 : i32
    %c0_i32_1 = arith.constant 0 : i32
    return %c0_i32, %c0_i32_0 : i32, i32
  }
  func.func @transform_2(%arg0: i32) -> (i32, i32) {
    %c0_i32 = arith.constant 0 : i32
    %c0_i32_0 = arith.constant 0 : i32
    %c0_i32_1 = arith.constant 0 : i32
    return %c0_i32, %c0_i32_0 : i32, i32
  }
  func.func @transform_3(%arg0: i32) -> (i32, i32, i32) {
    %c0_i32 = arith.constant 0 : i32
    %c0_i32_0 = arith.constant 0 : i32
    %c0_i32_1 = arith.constant 0 : i32
    %c0_i32_2 = arith.constant 0 : i32
    return %c0_i32, %c0_i32_0, %c0_i32_1 : i32, i32, i32
  }
  func.func @transform_4(%arg0: i32) -> (i32, i32) {
    %c0_i32 = arith.constant 0 : i32
    %c0_i32_0 = arith.constant 0 : i32
    %c0_i32_1 = arith.constant 0 : i32
    return %c0_i32, %c0_i32_0 : i32, i32
  }
  func.func @transform_5(%arg0: i32) -> (i32, i32, i32) {
    %c0_i32 = arith.constant 0 : i32
    %c0_i32_0 = arith.constant 0 : i32
    %c0_i32_1 = arith.constant 0 : i32
    %c0_i32_2 = arith.constant 0 : i32
    return %c0_i32, %c0_i32_0, %c0_i32_1 : i32, i32, i32
  }
  func.func @transform_6(%arg0: i32) -> (i32, i32) {
    %c0_i32 = arith.constant 0 : i32
    %c0_i32_0 = arith.constant 0 : i32
    %c0_i32_1 = arith.constant 0 : i32
    return %c0_i32, %c0_i32_0 : i32, i32
  }
  func.func @transform_7(%arg0: i32) -> (i32, i32, i32) {
    %c0_i32 = arith.constant 0 : i32
    %c0_i32_0 = arith.constant 0 : i32
    %c0_i32_1 = arith.constant 0 : i32
    %c0_i32_2 = arith.constant 0 : i32
    return %c0_i32, %c0_i32_0, %c0_i32_1 : i32, i32, i32
  }
  func.func @transform_8(%arg0: i32) -> (i32, i32) {
    %c0_i32 = arith.constant 0 : i32
    %c0_i32_0 = arith.constant 0 : i32
    %c0_i32_1 = arith.constant 0 : i32
    return %c0_i32, %c0_i32_0 : i32, i32
  }
  func.func @transform_9(%arg0: i32) -> (i32, i32) {
    %c0_i32 = arith.constant 0 : i32
    %c0_i32_0 = arith.constant 0 : i32
    %c0_i32_1 = arith.constant 0 : i32
    return %c0_i32, %c0_i32_0 : i32, i32
  }
  func.func @transform_10(%arg0: i32) -> (i32, i32) {
    %c0_i32 = arith.constant 0 : i32
    %c0_i32_0 = arith.constant 0 : i32
    %c0_i32_1 = arith.constant 0 : i32
    return %c0_i32, %c0_i32_0 : i32, i32
  }
  func.func @transform_11(%arg0: i32) -> (i32, i32) {
    %c0_i32 = arith.constant 0 : i32
    %c0_i32_0 = arith.constant 0 : i32
    return %arg0, %c0_i32 : i32, i32
  }
}

</mosaic_0001>

<bundles_post_ra>
// kernel: tpu_custom_call.1
= control target key start
LH: loop header
LB: loop body
LE: loop exit
PB: predicated region body
PF: predicated region fallthrough
CT: control target
= control target key end

     0   :  { %s3550_s0 = inlined_call_operand.vmem [shape: f32[16,16,12], index: 0, kind: input, shape index: {}]   ;;  %s3551_s1 = inlined_call_operand.vmem [shape: f32[12,32], index: 1, kind: input, shape index: {}]   ;;  %s3552_s2 = inlined_call_operand.hbm [shape: f32[1,32], index: 2, kind: input, shape index: {}]   ;;  %s3553_s3 = inlined_call_operand.vmem [shape: f32[3,32,64], index: 3, kind: input, shape index: {}]   ;;  %s3554_s4 = inlined_call_operand.vmem [shape: f32[1,64], index: 4, kind: input, shape index: {}]   ;;  %s3555_s5 = inlined_call_operand.vmem [shape: f32[2,64,32], index: 5, kind: input, shape index: {}]   ;;  %s3556_s6 = inlined_call_operand.vmem [shape: f32[1,32], index: 6, kind: input, shape index: {}]   ;;  %s3557_s7 = inlined_call_operand.vmem [shape: f32[7,32,112], index: 7, kind: input, shape index: {}]   ;;  %s3558_s8 = inlined_call_operand.vmem [shape: f32[1,112], index: 8, kind: input, shape index: {}]   ;;  %s3559_s9 = inlined_call_operand.vmem [shape: f32[112,128], index: 9, kind: input, shape index: {}]   ;;  %s3560_s10 = inlined_call_operand.vmem [shape: f32[1,128], index: 10, kind: input, shape index: {}]   ;;  %s3561_s11 = inlined_call_operand.hbm [shape: f32[16,128], index: 11, kind: output, shape index: {}]  }
   0x1   :  { %3563 = sst [smem:[#allocation10_spill]] %s3550_s0 }
   0x2   :  { %16 = vsyncpa [#allocation4], 0 }
   0x3   :  { %17 = vsyncpa [#allocation5], 0 }
   0x4   :  { %19 = vsyncpa [#allocation5 + $0x1], 0  ;;  %s2942_s17 = smov 0   ;;  %s2944_s18 = smov 0  }
   0x5   :  { %s2946_s19 = smov 0   ;;  %s2948_s20 = smov 0  }
   0x6 LB: > { %s2963_s21 = sadd.s32 4294967295, %s2876_s20   ;;  %s2205_s22 = sadd.s32 4294967294, %s2876_s20   ;;  %s2876_s20 = sphi %s2948_s20, %s3576_s20   ;;  %s2872_s19 = sphi %s2946_s19, %s3575_s19   ;;  %s2868_s18 = sphi %s2944_s18, %s3574_s18   ;;  %s2864_s17 = sphi %s2942_s17, %s3573_s17  }
   0x7   : > { %s2967_s23 = sadd.s32 1, %s2876_s20   ;;  %s32_s24 = sadd.s32 1, %s2872_s19 }
   0x8   : > { %s29_s25 = ssub.s32 %s2876_s20, %s2967_s23  ;;  %p39_p0 = scmp.ne.s32.totalorder %s2872_s19, %s2868_s18 }
   0x9   : > { %p30_p1 = scmp.eq.s32.totalorder %s29_s25, 0  ;;  %p40_p2 = scmp.eq.s32.totalorder %s2876_s20, 0 }
   0xa   : > { %p279_p3 = scmp.eq.s32.totalorder %s2963_s21, 1  ;;  %p284_p4 = scmp.ne.s32.totalorder %s2868_s18, %s2864_s17 }
   0xb   : > { %s2979_s26 = scalar_select %p30_p1, %s2872_s19, %s32_s24  }
   0xc   : > { %p2981_p5 = por %p40_p2, %p39_p0  ;;  %p2985_p6 = por %p279_p3, %p39_p0 }
   0xd   : > { %3564 = sst [smem:[#allocation9_spill]] %s2979_s26  ;;  %p285_p7 = scmp.eq.s32.totalorder %s2205_s22, 1 }
   0xe   : > { %s3566_s28 = scalar_select %p2985_p6, 1, 0 }
   0xf   : > { %p2206_p8 = scmp.ge.s32.totalorder %s2876_s20, 1  ;;  %p292_p9 = scmp.lt.s32.totalorder %s2876_s20, 3 }
  0x10   : > { %p2991_p10 = por %p285_p7, %p284_p4  ;;  %p2744_p11 = scmp.eq.s32.totalorder %s2963_s21, 0 }
  0x11   : > { %p2996_p12 = pnand %p2206_p8, %p292_p9  ;;  %s2878_s12 = smov [#allocation3]  }
  0x12   : > { %s3567_s29 = scalar_select %p2991_p10, 1, 0 }
  0x13   : > { %s308_s13 = sshll.u32 %s2878_s12, 4  ;;  %p2736_p13 = pneg %p2996_p12  ;;  %s309_s13 = int_to_ptr.vmem [resolvable:$true] %s308_s13 }
  0x14   : > { %s2797_s14 = scalar_lea.vmem %s309_s13, 16  ;;  %s2804_s15 = scalar_lea.vmem %s309_s13, 32 }
  0x15   : > { %p2737_p0 = pnand %p2744_p11, %p2736_p13  ;;  %p2798_p2 = scmp.ne.s32.totalorder %s309_s13, %s2797_s14 }
  0x16   : > { %p2805_p7 = scmp.lt.s32.totalorder %s309_s13, %s309_s13  ;;  %p2806_p10 = scmp.lt.s32.totalorder %s2804_s15, %s2797_s14 }
  0x17   : > { %p2788_p1 = pneg %p2737_p0 }
  0x18   : > { %p2807_p8 = por %p2806_p10, %p2805_p7 }
  0x19   : > { %p2800_p3 = pnand %p2798_p2, %p2788_p1 }
  0x1b   : > { %p2801_p4 = pneg %p2800_p3 }
  0x1d   : > { %p2808_p9 = pnand %p2807_p8, %p2801_p4 }
  0x1f   : > { %2811 = shalt.err (!%p2808_p9)
}
  0x20   : > { %2739 = dma.hbm_to_vmem [thread:$0]  (!%p2737_p0), %s3552_s2, 16, %s309_s13, [#allocation4]  }
  0x21   : > { %p2208_p6 = scmp.ge.s32.totalorder %s2876_s20, 2 }
  0x23   : > { %339 = sbr.rel (%p2208_p6) target bundleno = 58 (0x3a), region = 56 }
  0x28   : > { %342 = sbr.rel (!%p2981_p5) target bundleno = 58 (0x3a), region = 60  ;;  %s344_s24 = sand.u32 (%p2981_p5), 1, %s2872_s19  }
  0x29   : > { %s2210_s25 = sshll.u32 (%p2981_p5), %s2876_s20, 3  ;;  %s2209_s12 = sshll.u32 (%p2981_p5), %s344_s24, 7 }
  0x2a   : > { %s3569_s0 = sld [smem:[#allocation10_spill]] (%p2981_p5)  ;;  %s346_s27 = scalar_lea.vmem (%p2981_p5), [#allocation2], %s2209_s12 }
  0x30   : > { %s3017_s26 = scalar_lea.vmem %s3569_s0, %s2210_s25 }
  0x31   : > { %v407_v0 = vld [vmem:[%s3017_s26] sm:$0xff]  ;;  %v409_v1 = vld [vmem:[%s3017_s26 + $0x10] sm:$0xff] }
  0x32   : > { %v411_v2 = vld [vmem:[%s3017_s26 + $0x20] sm:$0xff]  ;;  %408 = vst [vmem:[%s346_s27] sm:$0xff] %v407_v0  ;;  %410 = vst [vmem:[%s346_s27 + $0x8] sm:$0xff] %v409_v1  ;;  %v413_v3 = vld [vmem:[%s3017_s26 + $0x30] sm:$0xff] }
  0x33   : > { %412 = vst [vmem:[%s346_s27 + $0x10] sm:$0xff] %v411_v2  ;;  %v415_v4 = vld [vmem:[%s3017_s26 + $0x40] sm:$0xff]  ;;  %v417_v5 = vld [vmem:[%s3017_s26 + $0x50] sm:$0xff]  ;;  %414 = vst [vmem:[%s346_s27 + $0x18] sm:$0xff] %v413_v3 }
  0x34   : > { %416 = vst [vmem:[%s346_s27 + $0x20] sm:$0xff] %v415_v4  ;;  %418 = vst [vmem:[%s346_s27 + $0x28] sm:$0xff] %v417_v5  ;;  %v419_v6 = vld [vmem:[%s3017_s26 + $0x60] sm:$0xff]  ;;  %v421_v7 = vld [vmem:[%s3017_s26 + $0x70] sm:$0xff] }
  0x35   : > { %v423_v8 = vld [vmem:[%s3017_s26 + $0x80] sm:$0xff]  ;;  %420 = vst [vmem:[%s346_s27 + $0x30] sm:$0xff] %v419_v6  ;;  %422 = vst [vmem:[%s346_s27 + $0x38] sm:$0xff] %v421_v7  ;;  %v425_v9 = vld [vmem:[%s3017_s26 + $0x90] sm:$0xff] }
  0x36   : > { %424 = vst [vmem:[%s346_s27 + $0x40] sm:$0xff] %v423_v8  ;;  %v427_v10 = vld [vmem:[%s3017_s26 + $0xa0] sm:$0xff]  ;;  %v429_v11 = vld [vmem:[%s3017_s26 + $0xb0] sm:$0xff]  ;;  %426 = vst [vmem:[%s346_s27 + $0x48] sm:$0xff] %v425_v9 }
  0x37   : > { %428 = vst [vmem:[%s346_s27 + $0x50] sm:$0xff] %v427_v10  ;;  %430 = vst [vmem:[%s346_s27 + $0x58] sm:$0xff] %v429_v11  ;;  %v431_v12 = vld [vmem:[%s3017_s26 + $0xc0] sm:$0xff]  ;;  %v433_v13 = vld [vmem:[%s3017_s26 + $0xd0] sm:$0xff] }
  0x38   : > { %v435_v14 = vld [vmem:[%s3017_s26 + $0xe0] sm:$0xff]  ;;  %432 = vst [vmem:[%s346_s27 + $0x60] sm:$0xff] %v431_v12  ;;  %434 = vst [vmem:[%s346_s27 + $0x68] sm:$0xff] %v433_v13  ;;  %v437_v15 = vld [vmem:[%s3017_s26 + $0xf0] sm:$0xff] }
  0x39   : > { %436 = vst [vmem:[%s346_s27 + $0x70] sm:$0xff] %v435_v14  ;;  %438 = vst [vmem:[%s346_s27 + $0x78] sm:$0xff] %v437_v15 }
  0x3a PF: > { %447 = sbr.rel (%p2996_p12) target bundleno = 1168 (0x490), region = 98  ;;  %s3038_s13 = sand.u32 (!%p2996_p12), 1, %s2868_s18  }
  0x3b   : > { %s2212_s16 = sshll.u32 (!%p2996_p12), %s3038_s13, 7 }
  0x3c   : > { %s3041_s22 = scalar_lea.vmem (!%p2996_p12), [#allocation2], %s2212_s16 }
  0x3f   : > { %2855 = dma.done.wait (%p2744_p11), [#allocation4], 16  }
  0x40   : > { %2857 = vsyncadd (%p2744_p11), [#allocation4], 4294967280  ;;  %vm567_vm0 = vcmask 1043456   ;;  %vm518_vm1 = vcmask 97280   ;;  %v510_v16 = vld [vmem:[%s3551_s1 + $0x8] sm:$0xf] }
  0x41   : > { %v509_v17 = vld [vmem:[%s3551_s1] sm:$0xff]  ;;  %2460 = vmatprep.subr.msk.mxu0 %vm567_vm0, %v510_v16  ;;  %v494_v19 = vld [vmem:[%s3041_s22 + $0x8] sm:$0xff]  ;;  %v495_v20 = vld [vmem:[%s3041_s22 + $0x10] sm:$0xff]  ;;  %v2879_v41 = vmov 0.0   ;;  %vm781_vm4 = vcmask 261120   ;;  %s2214_s30 = sshll.u32 %s3038_s13, 3 }
  0x42   : > { %v493_v18 = vld [vmem:[%s3041_s22] sm:$0xff]  ;;  %2461 = vmatpush3.msk.msra.mxu0 %vm567_vm0, %v510_v16  ;;  %v496_v21 = vld [vmem:[%s3041_s22 + $0x18] sm:$0xff]  ;;  %v498_v24 = vld [vmem:[%s3041_s22 + $0x28] sm:$0xff]  ;;  %2516 = vmatprep.mubr.f32.mxu1 %v2879_v41  ;;  %s492_s12 = scalar_lea.vmem [#allocation6], %s2214_s30  ;;  %s2115_s26 = scalar_lea.sflag [#allocation5], %s3038_s13 }
  0x43   : > { %2464 = vmatprep.mubr.msk.f32.mxu0 %vm518_vm1, %v493_v18  ;;  %2462 = vmatprep.subr.mxu0 %v509_v17  ;;  %v2236_v22 = vld [vmem:[%s3553_s3 + $0x38] sm:$0xff]  ;;  %v497_v23 = vld [vmem:[%s3041_s22 + $0x20] sm:$0xff]  ;;  %v499_v25 = vld [vmem:[%s3041_s22 + $0x30] sm:$0xff]  ;;  %s2128_s14 = sshll.u32 %s492_s12, 4  ;;  %p3570_p10 = scmp.ne.s32.totalorder %s3566_s28, 0  ;;  %s2129_s14 = int_to_ptr.vmem [resolvable:$true] %s2128_s14 }
  0x44   : > { %2463 = vmatpush3.msra.mxu0 %v509_v17  ;;  %v500_v26 = vld [vmem:[%s3041_s22 + $0x38] sm:$0xff]  ;;  %v501_v27 = vld [vmem:[%s3041_s22 + $0x40] sm:$0xff]  ;;  %v502_v28 = vld [vmem:[%s3041_s22 + $0x48] sm:$0xff]  ;;  %s2812_s0 = scalar_lea.vmem %s2129_s14, 128  ;;  %s2881_s24 = smov [#allocation6]  }
  0x45   : > { %2465 = vmatmul.mubr.msk.f32.vlgmr.msra.gmra.mxu0 %vm518_vm1, %v494_v19  ;;  %2488 = vmatprep.subr.mxu0 %v2236_v22  ;;  %v503_v29 = vld [vmem:[%s3041_s22 + $0x50] sm:$0xff]  ;;  %v504_v30 = vld [vmem:[%s3041_s22 + $0x58] sm:$0xff]  ;;  %v505_v31 = vld [vmem:[%s3041_s22 + $0x60] sm:$0xff]  ;;  %p2813_p5 = scmp.ne.s32.totalorder %s2129_s14, %s2812_s0 }
  0x46   : > { %2467 = vmatprep.mubr.msk.f32.mxu0 %vm518_vm1, %v495_v20  ;;  %2489 = vmatpush3.msra.mxu0 %v2236_v22  ;;  %v506_v32 = vld [vmem:[%s3041_s22 + $0x68] sm:$0xff]  ;;  %v507_v33 = vld [vmem:[%s3041_s22 + $0x70] sm:$0xff]  ;;  %v508_v34 = vld [vmem:[%s3041_s22 + $0x78] sm:$0xff]  ;;  %s2323_s22 = sshll.u32 %s2963_s21, 7  ;;  %s2816_s21 = sshll.u32 %s2881_s24, 4  ;;  %s2817_s21 = int_to_ptr.vmem [resolvable:$false] %s2816_s21 }
  0x47   : > { %v775_v35 = vld [vmem:[%s3553_s3 + $0x18] sm:$0xff]  ;;  %v774_v36 = vld [vmem:[%s3553_s3 + $0x10] sm:$0xff]  ;;  %v773_v38 = vld [vmem:[%s3553_s3 + $0x8] sm:$0xff]  ;;  %s3513_s16 = scalar_lea.hbm %s3561_s11, %s2323_s22  ;;  %p2814_p11 = pnand %p2813_p5, %p3570_p10 }
  0x48   : > { %2508 = vmatprep.subr.mxu1 %v775_v35  ;;  %v2235_v37 = vld [vmem:[%s3553_s3 + $0x30] sm:$0xff]  ;;  %v772_v39 = vld [vmem:[%s3553_s3] sm:$0xff]  ;;  %v2234_v40 = vld [vmem:[%s3553_s3 + $0x28] sm:$0xff]  ;;  %s2818_s30 = scalar_lea.vmem %s2817_s21, 256  ;;  %p2819_p13 = scmp.lt.s32.totalorder %s2129_s14, %s2817_s21 }
  0x49   : > { %2468 = vmatmul.mubr.msk.f32.gmra.mxu0 %vm518_vm1, %v496_v21  ;;  %2509 = vmatpush3.msra.mxu1 %v775_v35  ;;  %v2233_v42 = vld [vmem:[%s3553_s3 + $0x20] sm:$0xff]  ;;  %v2255_v43 = vld [vmem:[%s3553_s3 + $0x58] sm:$0xff]  ;;  %v2254_v7 = vld [vmem:[%s3553_s3 + $0x50] sm:$0xff]  ;;  %p2815_p12 = pneg %p2814_p11  ;;  %p2820_p0 = scmp.lt.s32.totalorder %s2818_s30, %s2812_s0 }
  0x4a   : > { %2470 = vmatprep.mubr.msk.f32.mxu0 %vm518_vm1, %v497_v23  ;;  %2510 = vmatprep.subr.mxu1 %v774_v36  ;;  %v3114_v44 = vld [vmem:[#allocation3] ss:$0 sm:$0xff]  ;;  %v2253_v15 = vld [vmem:[%s3553_s3 + $0x48] sm:$0xff] }
  0x4b   : > { %2511 = vmatpush3.msra.mxu1 %v774_v36  ;;  %2490 = vmatprep.subr.mxu0 %v2235_v37  ;;  %v2252_v19 = vld [vmem:[%s3553_s3 + $0x40] sm:$0xff]  ;;  %p2821_p1 = por %p2820_p0, %p2819_p13 }
  0x4c   : > { %2512 = vmatprep.subr.mxu1 %v773_v38  ;;  %2491 = vmatpush3.msra.mxu0 %v2235_v37 }
  0x4d   : > { %2471 = vmatmul.mubr.msk.f32.gmra.mxu0 %vm518_vm1, %v498_v24  ;;  %2513 = vmatpush3.msra.mxu1 %v773_v38  ;;  %p2822_p2 = pnand %p2821_p1, %p2815_p12 }
  0x4e   : > { %2473 = vmatprep.mubr.msk.f32.mxu0 %vm518_vm1, %v499_v25  ;;  %2514 = vmatprep.subr.mxu1 %v772_v39 }
  0x4f   : > { %2515 = vmatpush3.msra.mxu1 %v772_v39  ;;  %2492 = vmatprep.subr.mxu0 %v2234_v40 }
  0x50   : > { %2548 = vmatprep.subr.mxu1 %v2879_v41  ;;  %2493 = vmatpush3.msra.mxu0 %v2234_v40 }
  0x51   : > { %2474 = vmatmul.mubr.msk.f32.gmra.mxu0 %vm518_vm1, %v500_v26  ;;  %2494 = vmatprep.subr.mxu0 %v2233_v42 }
  0x52   : > { %2476 = vmatprep.mubr.msk.f32.mxu0 %vm518_vm1, %v501_v27  ;;  %2495 = vmatpush3.msra.mxu0 %v2233_v42 }
  0x53   : > { %2528 = vmatprep.subr.mxu0 %v2255_v43 }
  0x55   : > { %2477 = vmatmul.mubr.msk.f32.gmra.mxu0 %vm518_vm1, %v502_v28 }
  0x56   : > { %2479 = vmatprep.mubr.msk.f32.mxu0 %vm518_vm1, %v503_v29 }
  0x59   : > { %2480 = vmatmul.mubr.msk.f32.gmra.mxu0 %vm518_vm1, %v504_v30 }
  0x5a   : > { %2482 = vmatprep.mubr.msk.f32.mxu0 %vm518_vm1, %v505_v31 }
  0x5d   : > { %2483 = vmatmul.mubr.msk.f32.gmra.mxu0 %vm518_vm1, %v506_v32 }
  0x5e   : > { %2485 = vmatprep.mubr.msk.f32.mxu0 %vm518_vm1, %v507_v33 }
  0x61   : > { %2486 = vmatmul.mubr.msk.f32.gmra.mxu0 %vm518_vm1, %v508_v34 }
 0x105   : > { %v2466_v45 = vpop.f32.mrf.mxu0 }
 0x106   : > { %v643_v46 = vadd.f32 %v2466_v45, %v3114_v44 }
 0x107   : > { %v637_v47 = vpop.f32.mrf.mxu0 }
 0x108   : > { %v733_v48 = vmul.f32 0.1, %v643_v46  ;;  %v638_v49 = vadd.f32 %v3114_v44, %v637_v47  ;;  %vm717_vm2 = vcmp.gt.f32.partialorder %v643_v46, 0.0 }
 0x109   : > { %v2469_v50 = vpop.f32.mrf.mxu0 }
 0x10a   : > { %vm716_vm3 = vcmp.gt.f32.partialorder %v638_v49, 0.0  ;;  %v732_v51 = vmul.f32 0.1, %v638_v49  ;;  %v653_v52 = vadd.f32 %v2469_v50, %v3114_v44  ;;  %v749_v54 = vsel %vm717_vm2, %v643_v46, %v733_v48 }
 0x10b   : > { %v647_v53 = vpop.f32.mrf.mxu0 }
 0x10c   : > { %v748_v55 = vsel %vm716_vm3, %v638_v49, %v732_v51  ;;  %v735_v56 = vmul.f32 0.1, %v653_v52  ;;  %v648_v57 = vadd.f32 %v3114_v44, %v647_v53  ;;  %vm719_vm5 = vcmp.gt.f32.partialorder %v653_v52, 0.0 }
 0x10d   : > { %v764_v58 = vmax.f32 %v748_v55, %v749_v54  ;;  %v2472_v59 = vpop.f32.mrf.mxu0  ;;  %vm2880_vm3 = vmmov 0  }
 0x10e   : > { %vm718_vm6 = vcmp.gt.f32.partialorder %v648_v57, 0.0  ;;  %v734_v60 = vmul.f32 0.1, %v648_v57  ;;  %v663_v61 = vadd.f32 %v2472_v59, %v3114_v44  ;;  %v751_v63 = vsel %vm719_vm5, %v653_v52, %v735_v56  ;;  %v2270_v59 = vld [vmem:[%s3555_s5 + $0x70] sm:$0xff] }
 0x10f   : > { %v657_v62 = vpop.f32.mrf.mxu0  ;;  %2496 = vmatprep.mubr.msk.f32.mxu0 %vm781_vm4, %v764_v58  ;;  %2517 = vmatmul.mubr.msk.f32.vlgmr.msra.gmra.mxu1 %vm781_vm4, %v764_v58  ;;  %v1183_v58 = vld [vmem:[%s3555_s5 + $0x38] sm:$0xff] }
 0x110   : > { %v750_v0 = vsel %vm718_vm6, %v648_v57, %v734_v60  ;;  %v737_v1 = vmul.f32 0.1, %v663_v61  ;;  %v658_v2 = vadd.f32 %v3114_v44, %v657_v62  ;;  %vm721_vm7 = vcmp.gt.f32.partialorder %v663_v61, 0.0  ;;  %v1182_v60 = vld [vmem:[%s3555_s5 + $0x30] sm:$0xff]  ;;  %v1181_v62 = vld [vmem:[%s3555_s5 + $0x28] sm:$0xff] }
 0x111   : > { %v3124_v3 = vmax.f32 %v750_v0, %v751_v63  ;;  %v2475_v4 = vpop.f32.mrf.mxu0  ;;  %v2268_v63 = vld [vmem:[%s3555_s5 + $0x60] sm:$0xff]  ;;  %vm1193_vm6 = vcmask 523264  }
 0x112   : > { %vm720_vm8 = vcmp.gt.f32.partialorder %v658_v2, 0.0  ;;  %v736_v5 = vmul.f32 0.1, %v658_v2  ;;  %v673_v6 = vadd.f32 %v2475_v4, %v3114_v44  ;;  %v753_v9 = vsel %vm721_vm7, %v663_v61, %v737_v1  ;;  %v2269_v61 = vld [vmem:[%s3555_s5 + $0x68] sm:$0xff]  ;;  %v1180_v0 = vld [vmem:[%s3555_s5 + $0x20] sm:$0xff]  ;;  %v2267_v1 = vld [vmem:[%s3555_s5 + $0x58] sm:$0xff] }
 0x113   : > { %v667_v8 = vpop.f32.mrf.mxu0  ;;  %2497 = vmatmul.mubr.msk.f32.vlgmr.msra.gmra.mxu0 %vm781_vm4, %v3124_v3  ;;  %2519 = vmatprep.mubr.msk.f32.mxu1 %vm781_vm4, %v3124_v3  ;;  %v1178_v4 = vld [vmem:[%s3555_s5 + $0x10] sm:$0xff] }
 0x114   : > { %v752_v10 = vsel %vm720_vm8, %v658_v2, %v736_v5  ;;  %v739_v11 = vmul.f32 0.1, %v673_v6  ;;  %v668_v12 = vadd.f32 %v3114_v44, %v667_v8  ;;  %2529 = vmatpush3.msra.mxu0 %v2255_v43  ;;  %vm723_vm9 = vcmp.gt.f32.partialorder %v673_v6, 0.0  ;;  %v1179_v2 = vld [vmem:[%s3555_s5 + $0x18] sm:$0xff]  ;;  %v2265_v5 = vld [vmem:[%s3555_s5 + $0x48] sm:$0xff]  ;;  %v1176_v8 = vld [vmem:[%s3555_s5] sm:$0xff] }
 0x115   : > { %v3135_v13 = vmax.f32 %v752_v10, %v753_v9  ;;  %v2478_v14 = vpop.f32.mrf.mxu0  ;;  %2530 = vmatprep.subr.mxu0 %v2254_v7 }
 0x116   : > { %vm722_vm10 = vcmp.gt.f32.partialorder %v668_v12, 0.0  ;;  %v738_v16 = vmul.f32 0.1, %v668_v12  ;;  %v683_v17 = vadd.f32 %v2478_v14, %v3114_v44  ;;  %2531 = vmatpush3.msra.mxu0 %v2254_v7  ;;  %v755_v20 = vsel %vm723_vm9, %v673_v6, %v739_v11  ;;  %v1177_v6 = vld [vmem:[%s3555_s5 + $0x8] sm:$0xff]  ;;  %v2264_v7 = vld [vmem:[%s3555_s5 + $0x40] sm:$0xff] }
 0x117   : > { %v677_v18 = vpop.f32.mrf.mxu0  ;;  %2499 = vmatprep.mubr.msk.f32.mxu0 %vm781_vm4, %v3135_v13  ;;  %2520 = vmatmul.mubr.msk.f32.gmra.mxu1 %vm781_vm4, %v3135_v13 }
 0x118   : > { %v754_v21 = vsel %vm722_vm10, %v668_v12, %v738_v16  ;;  %v741_v22 = vmul.f32 0.1, %v683_v17  ;;  %v678_v23 = vadd.f32 %v3114_v44, %v677_v18  ;;  %2532 = vmatprep.subr.mxu0 %v2253_v15  ;;  %vm725_vm11 = vcmp.gt.f32.partialorder %v683_v17, 0.0 }
 0x119   : > { %v767_v24 = vmax.f32 %v754_v21, %v755_v20  ;;  %v2481_v25 = vpop.f32.mrf.mxu0  ;;  %2533 = vmatpush3.msra.mxu0 %v2253_v15 }
 0x11a   : > { %vm724_vm12 = vcmp.gt.f32.partialorder %v678_v23, 0.0  ;;  %v740_v26 = vmul.f32 0.1, %v678_v23  ;;  %v693_v27 = vadd.f32 %v2481_v25, %v3114_v44  ;;  %2534 = vmatprep.subr.mxu0 %v2252_v19  ;;  %v757_v29 = vsel %vm725_vm11, %v683_v17, %v741_v22  ;;  %v3250_v22 = vld [vmem:[%s3554_s4] ss:$0 sm:$0xff] }
 0x11b   : > { %v687_v28 = vpop.f32.mrf.mxu0  ;;  %2500 = vmatmul.mubr.msk.f32.gmra.mxu0 %vm781_vm4, %v767_v24  ;;  %2522 = vmatprep.mubr.msk.f32.mxu1 %vm781_vm4, %v767_v24 }
 0x11c   : > { %v756_v30 = vsel %vm724_vm12, %v678_v23, %v740_v26  ;;  %v743_v31 = vmul.f32 0.1, %v693_v27  ;;  %v688_v32 = vadd.f32 %v3114_v44, %v687_v28  ;;  %2535 = vmatpush3.msra.mxu0 %v2252_v19  ;;  %vm727_vm13 = vcmp.gt.f32.partialorder %v693_v27, 0.0 }
 0x11d   : > { %v768_v33 = vmax.f32 %v756_v30, %v757_v29  ;;  %v2484_v34 = vpop.f32.mrf.mxu0  ;;  %2585 = vmatprep.subr.mxu0 %v2879_v41 }
 0x11e   : > { %vm726_vm14 = vcmp.gt.f32.partialorder %v688_v32, 0.0  ;;  %v742_v35 = vmul.f32 0.1, %v688_v32  ;;  %v703_v36 = vadd.f32 %v2484_v34, %v3114_v44  ;;  %v759_v38 = vsel %vm727_vm13, %v693_v27, %v743_v31 }
 0x11f   : > { %v697_v37 = vpop.f32.mrf.mxu0  ;;  %2502 = vmatprep.mubr.msk.f32.mxu0 %vm781_vm4, %v768_v33  ;;  %2523 = vmatmul.mubr.msk.f32.gmra.mxu1 %vm781_vm4, %v768_v33 }
 0x120   : > { %v758_v39 = vsel %vm726_vm14, %v688_v32, %v742_v35  ;;  %v745_v40 = vmul.f32 0.1, %v703_v36  ;;  %v698_v42 = vadd.f32 %v3114_v44, %v697_v37  ;;  %vm729_vm15 = vcmp.gt.f32.partialorder %v703_v36, 0.0  ;;  %v1457_v37 = vld [vmem:[%s3557_s7 + $0x18] sm:$0xff] }
 0x121   : > { %v769_v43 = vmax.f32 %v758_v39, %v759_v38  ;;  %v2487_v45 = vpop.f32.mrf.mxu0 }
 0x122   : > { %vm728_vm0 = vcmp.gt.f32.partialorder %v698_v42, 0.0  ;;  %v744_v46 = vmul.f32 0.1, %v698_v42  ;;  %v713_v47 = vadd.f32 %v2487_v45, %v3114_v44  ;;  %v761_v49 = vsel %vm729_vm15, %v703_v36, %v745_v40  ;;  %v1456_v45 = vld [vmem:[%s3557_s7 + $0x10] sm:$0xff] }
 0x123   : > { %v707_v48 = vpop.f32.mrf.mxu0  ;;  %2503 = vmatmul.mubr.msk.f32.gmra.mxu0 %vm781_vm4, %v769_v43  ;;  %2525 = vmatprep.mubr.msk.f32.mxu1 %vm781_vm4, %v769_v43 }
 0x124   : > { %v760_v50 = vsel %vm728_vm0, %v698_v42, %v744_v46  ;;  %v747_v51 = vmul.f32 0.1, %v713_v47  ;;  %v708_v52 = vadd.f32 %v3114_v44, %v707_v48  ;;  %vm731_vm1 = vcmp.gt.f32.partialorder %v713_v47, 0.0  ;;  %v2271_v44 = vld [vmem:[%s3555_s5 + $0x78] sm:$0xff] }
 0x125   : > { %v770_v53 = vmax.f32 %v760_v50, %v761_v49  ;;  %2549 = vmatpush3.msra.mxu1 %v2271_v44  ;;  %v2297_v48 = vld [vmem:[%s3557_s7 + $0x58] sm:$0xff]  ;;  %v2296_v44 = vld [vmem:[%s3557_s7 + $0x50] sm:$0xff] }
 0x126   : > { %vm730_vm2 = vcmp.gt.f32.partialorder %v708_v52, 0.0  ;;  %v746_v54 = vmul.f32 0.1, %v708_v52  ;;  %v763_v55 = vsel %vm731_vm1, %v713_v47, %v747_v51  ;;  %2550 = vmatprep.subr.mxu1 %v2879_v41 }
 0x127   : > { %2505 = vmatprep.mubr.msk.f32.mxu0 %vm781_vm4, %v770_v53  ;;  %2526 = vmatmul.mubr.msk.f32.gmra.mxu1 %vm781_vm4, %v770_v53 }
 0x128   : > { %v762_v56 = vsel %vm730_vm2, %v708_v52, %v746_v54  ;;  %2551 = vmatpush3.msra.mxu1 %v2270_v59  ;;  %2564 = vmatprep.mubr.msk.f32.mxu1 %vm2880_vm3, %v2879_v41  ;;  %v1455_v52 = vld [vmem:[%s3557_s7 + $0x8] sm:$0xff] }
 0x129   : > { %v771_v57 = vmax.f32 %v762_v56, %v763_v55  ;;  %2552 = vmatprep.subr.mxu1 %v2879_v41 }
 0x12a   : > { %2553 = vmatpush3.msra.mxu1 %v2269_v61 }
 0x12b   : > { %2506 = vmatmul.mubr.msk.f32.gmra.mxu0 %vm781_vm4, %v771_v57  ;;  %2554 = vmatprep.subr.mxu1 %v2879_v41 }
 0x12c   : > { %2536 = vmatprep.mubr.msk.f32.mxu0 %vm781_vm4, %v3124_v3  ;;  %2555 = vmatpush3.msra.mxu1 %v2268_v63  ;;  %v2266_v3 = vld [vmem:[%s3555_s5 + $0x50] sm:$0xff] }
 0x12d   : > { %2556 = vmatprep.subr.mxu1 %v2879_v41 }
 0x12e   : > { %2557 = vmatpush3.msra.mxu1 %v2267_v1 }
 0x12f   : > { %2537 = vmatmul.mubr.msk.f32.vlgmr.msra.gmra.mxu0 %vm781_vm4, %v3135_v13  ;;  %2558 = vmatprep.subr.mxu1 %v2879_v41 }
 0x130   : > { %2539 = vmatprep.mubr.msk.f32.mxu0 %vm781_vm4, %v767_v24  ;;  %2586 = vmatpush3.msra.mxu0 %v1183_v58 }
 0x131   : > { %2587 = vmatprep.subr.mxu0 %v2879_v41  ;;  %2559 = vmatpush3.msra.mxu1 %v2266_v3 }
 0x132   : > { %2588 = vmatpush3.msra.mxu0 %v1182_v60  ;;  %2560 = vmatprep.subr.mxu1 %v2879_v41 }
 0x133   : > { %2540 = vmatmul.mubr.msk.f32.gmra.mxu0 %vm781_vm4, %v768_v33  ;;  %2589 = vmatprep.subr.mxu0 %v2879_v41 }
 0x134   : > { %2542 = vmatprep.mubr.msk.f32.mxu0 %vm781_vm4, %v769_v43  ;;  %2590 = vmatpush3.msra.mxu0 %v1181_v62 }
 0x135   : > { %2591 = vmatprep.subr.mxu0 %v2879_v41  ;;  %2561 = vmatpush3.msra.mxu1 %v2265_v5 }
 0x136   : > { %2592 = vmatpush3.msra.mxu0 %v1180_v0  ;;  %2562 = vmatprep.subr.mxu1 %v2879_v41 }
 0x137   : > { %2543 = vmatmul.mubr.msk.f32.gmra.mxu0 %vm781_vm4, %v770_v53  ;;  %2593 = vmatprep.subr.mxu0 %v2879_v41 }
 0x138   : > { %2545 = vmatprep.mubr.msk.f32.mxu0 %vm781_vm4, %v771_v57  ;;  %2594 = vmatpush3.msra.mxu0 %v1179_v2 }
 0x139   : > { %2595 = vmatprep.subr.mxu0 %v2879_v41  ;;  %2563 = vmatpush3.msra.mxu1 %v2264_v7 }
 0x13a   : > { %2596 = vmatpush3.msra.mxu0 %v1178_v4  ;;  %2622 = vmatprep.subr.mxu1 %v2879_v41 }
 0x13b   : > { %2546 = vmatmul.mubr.f32.gmra.mxu0 %v2879_v41  ;;  %2597 = vmatprep.subr.mxu0 %v2879_v41 }
 0x13c   : > { %2598 = vmatpush3.msra.mxu0 %v1177_v6  ;;  %2601 = vmatprep.mubr.msk.f32.mxu0 %vm2880_vm3, %v2879_v41 }
 0x13d   : > { %2599 = vmatprep.subr.mxu0 %v2879_v41 }
 0x13e   : > { %2600 = vmatpush3.msra.mxu0 %v1176_v8 }
 0x13f   : > { %2644 = vmatprep.subr.mxu0 %v2879_v41 }
 0x1cf   : > { %v2518_v14 = vpop.f32.mrf.mxu1 }
 0x1d1   : > { %v980_v16 = vpop.f32.mrf.mxu1 }
 0x1d3   : > { %v2498_v9 = vpop.f32.mrf.mxu0 }
 0x1d4   : > { %v986_v20 = vadd.f32 %v2518_v14, %v2498_v9 }
 0x1d5   : > { %v872_v10 = vpop.f32.mrf.mxu0 }
 0x1d6   : > { %v981_v23 = vadd.f32 %v980_v16, %v872_v10  ;;  %v1454_v16 = vld [vmem:[%s3557_s7] sm:$0xff] }
 0x1d7   : > { %v2521_v18 = vpop.f32.mrf.mxu1 }
 0x1d9   : > { %v990_v25 = vpop.f32.mrf.mxu1 }
 0x1db   : > { %v2501_v11 = vpop.f32.mrf.mxu0 }
 0x1dc   : > { %v996_v29 = vadd.f32 %v2521_v18, %v2501_v11  ;;  %v2294_v18 = vld [vmem:[%s3557_s7 + $0x40] sm:$0xff] }
 0x1dd   : > { %v882_v12 = vpop.f32.mrf.mxu0 }
 0x1de   : > { %v991_v34 = vadd.f32 %v990_v25, %v882_v12 }
 0x1df   : > { %v2524_v30 = vpop.f32.mrf.mxu1 }
 0x1e1   : > { %v1000_v40 = vpop.f32.mrf.mxu1 }
 0x1e3   : > { %v2504_v13 = vpop.f32.mrf.mxu0 }
 0x1e4   : > { %v1006_v55 = vadd.f32 %v2524_v30, %v2504_v13 }
 0x1e5   : > { %v892_v15 = vpop.f32.mrf.mxu0 }
 0x1e6   : > { %v1001_v46 = vadd.f32 %v1000_v40, %v892_v15  ;;  %v2290_v40 = vld [vmem:[%s3557_s7 + $0x28] sm:$0xff] }
 0x1e7   : > { %v2527_v53 = vpop.f32.mrf.mxu1 }
 0x1e9   : > { %v1010_v62 = vpop.f32.mrf.mxu1 }
 0x1eb   : > { %v3243_v17 = vpop.f32.mrf.mxu0 }
 0x1ec   : > { %v1016_v5 = vadd.f32 %v2527_v53, %v3243_v17  ;;  %v2295_v17 = vld [vmem:[%s3557_s7 + $0x48] sm:$0xff] }
 0x1ed   : > { %v3245_v19 = vpop.f32.mrf.mxu0 }
 0x1ee   : > { %v1011_v0 = vadd.f32 %v1010_v62, %v3245_v19 }
 0x1ef   : > { %v2538_v21 = vpop.f32.mrf.mxu0 }
 0x1f0   : > { %v1130_v24 = vadd.f32 %v2538_v21, %v986_v20 }
 0x1f1   : > { %v1090_v26 = vpop.f32.mrf.mxu0 }
 0x1f2   : > { %v1145_v27 = vadd.f32 %v3250_v22, %v1130_v24  ;;  %v1129_v28 = vadd.f32 %v1090_v26, %v981_v23 }
 0x1f3   : > { %v2541_v31 = vpop.f32.mrf.mxu0 }
 0x1f4   : > { %vm1153_vm5 = vcmp.gt.f32.partialorder %v1145_v27, 0.0  ;;  %v1161_v32 = vmul.f32 0.1, %v1145_v27  ;;  %v1144_v33 = vadd.f32 %v3250_v22, %v1129_v28  ;;  %v1132_v35 = vadd.f32 %v2541_v31, %v996_v29  ;;  %v2292_v31 = vld [vmem:[%s3557_s7 + $0x38] sm:$0xff] }
 0x1f5   : > { %v1100_v36 = vpop.f32.mrf.mxu0 }
 0x1f6   : > { %v1169_v38 = vsel %vm1153_vm5, %v1145_v27, %v1161_v32  ;;  %vm1152_vm7 = vcmp.gt.f32.partialorder %v1144_v33, 0.0  ;;  %v1160_v39 = vmul.f32 0.1, %v1144_v33  ;;  %v1131_v42 = vadd.f32 %v1100_v36, %v991_v34  ;;  %v2291_v36 = vld [vmem:[%s3557_s7 + $0x30] sm:$0xff] }
 0x1f7   : > { %v2544_v43 = vpop.f32.mrf.mxu0  ;;  %2565 = vmatmul.mubr.msk.f32.vlgmr.msra.gmra.mxu1 %vm1193_vm6, %v1169_v38  ;;  %v1147_v49 = vadd.f32 %v3250_v22, %v1132_v35 }
 0x1f8   : > { %v1168_v47 = vsel %vm1152_vm7, %v1144_v33, %v1160_v39  ;;  %2567 = vmatprep.mubr.msk.f32.mxu1 %vm2880_vm3, %v2879_v41  ;;  %2623 = vmatpush3.msra.mxu1 %v1457_v37  ;;  %v1146_v50 = vadd.f32 %v3250_v22, %v1131_v42  ;;  %v1134_v59 = vadd.f32 %v2544_v43, %v1006_v55  ;;  %v2307_v55 = vld [vmem:[%s3557_s7 + $0x98] sm:$0xff] }
 0x1f9   : > { %v1110_v51 = vpop.f32.mrf.mxu0  ;;  %2602 = vmatmul.mubr.msk.f32.vlgmr.msra.gmra.mxu0 %vm1193_vm6, %v1168_v47  ;;  %2624 = vmatprep.subr.mxu1 %v2879_v41  ;;  %v1163_v58 = vmul.f32 0.1, %v1147_v49  ;;  %vm1155_vm9 = vcmp.gt.f32.partialorder %v1147_v49, 0.0  ;;  %v2289_v47 = vld [vmem:[%s3557_s7 + $0x20] sm:$0xff] }
 0x1fa   : > { %v1133_v54 = vadd.f32 %v1110_v51, %v1001_v46  ;;  %2604 = vmatprep.mubr.msk.f32.mxu0 %vm2880_vm3, %v2879_v41  ;;  %2625 = vmatpush3.msra.mxu1 %v1456_v45  ;;  %v1162_v56 = vmul.f32 0.1, %v1146_v50  ;;  %vm1154_vm8 = vcmp.gt.f32.partialorder %v1146_v50, 0.0  ;;  %v1149_v1 = vadd.f32 %v3250_v22, %v1134_v59 }
 0x1fb   : > { %v2547_v57 = vpop.f32.mrf.mxu0  ;;  %2645 = vmatpush3.msra.mxu0 %v2297_v48  ;;  %2626 = vmatprep.subr.mxu1 %v2879_v41  ;;  %v1171_v4 = vsel %vm1155_vm9, %v1147_v49, %v1163_v58  ;;  %v2301_v58 = vld [vmem:[%s3557_s7 + $0x70] sm:$0xff] }
 0x1fc   : > { %2627 = vmatpush3.msra.mxu1 %v1455_v52  ;;  %2646 = vmatprep.subr.mxu0 %v2879_v41  ;;  %v1148_v60 = vadd.f32 %v3250_v22, %v1133_v54  ;;  %v1170_v61 = vsel %vm1154_vm8, %v1146_v50, %v1162_v56  ;;  %v1165_v6 = vmul.f32 0.1, %v1149_v1  ;;  %v1136_v7 = vadd.f32 %v2547_v57, %v1016_v5  ;;  %v2302_v52 = vld [vmem:[%s3557_s7 + $0x78] sm:$0xff]  ;;  %v2299_v5 = vld [vmem:[%s3557_s7 + $0x60] sm:$0xff] }
 0x1fd   : > { %2605 = vmatmul.mubr.msk.f32.gmra.mxu0 %vm1193_vm6, %v1169_v38  ;;  %2628 = vmatprep.subr.mxu1 %v2879_v41  ;;  %v1120_v63 = vpop.f32.mrf.mxu0  ;;  %vm1157_vm11 = vcmp.gt.f32.partialorder %v1149_v1, 0.0 }
 0x1fe   : > { %2568 = vmatmul.mubr.msk.f32.gmra.mxu1 %vm1193_vm6, %v1170_v61  ;;  %2607 = vmatprep.mubr.msk.f32.mxu0 %vm2880_vm3, %v2879_v41  ;;  %v1164_v2 = vmul.f32 0.1, %v1148_v60  ;;  %v1135_v3 = vadd.f32 %v1120_v63, %v1011_v0  ;;  %vm1156_vm10 = vcmp.gt.f32.partialorder %v1148_v60, 0.0  ;;  %v1151_v10 = vadd.f32 %v3250_v22, %v1136_v7  ;;  %v2300_v63 = vld [vmem:[%s3557_s7 + $0x68] sm:$0xff] }
 0x1ff   : > { %2570 = vmatprep.mubr.msk.f32.mxu1 %vm2880_vm3, %v2879_v41  ;;  %2647 = vmatpush3.msra.mxu0 %v2296_v44  ;;  %v1173_v12 = vsel %vm1157_vm11, %v1149_v1, %v1165_v6 }
 0x200   : > { %2648 = vmatprep.subr.mxu0 %v2879_v41  ;;  %v1150_v8 = vadd.f32 %v3250_v22, %v1135_v3  ;;  %v1172_v9 = vsel %vm1156_vm10, %v1148_v60, %v1164_v2  ;;  %v1167_v13 = vmul.f32 0.1, %v1151_v10  ;;  %vm1159_vm13 = vcmp.gt.f32.partialorder %v1151_v10, 0.0  ;;  %2629 = vmatpush3.msra.mxu1 %v1454_v16  ;;  %v3339_v22 = vld [vmem:[%s3556_s6] ss:$0 sm:$0xff]  ;;  %v2306_v60 = vld [vmem:[%s3557_s7 + $0x90] sm:$0xff] }
 0x201   : > { %2608 = vmatmul.mubr.msk.f32.gmra.mxu0 %vm1193_vm6, %v1170_v61  ;;  %2633 = vmatprep.subr.mxu1 %v2879_v41  ;;  %v2305_v2 = vld [vmem:[%s3557_s7 + $0x88] sm:$0xff] }
 0x202   : > { %2571 = vmatmul.mubr.msk.f32.gmra.mxu1 %vm1193_vm6, %v1171_v4  ;;  %2610 = vmatprep.mubr.msk.f32.mxu0 %vm2880_vm3, %v2879_v41  ;;  %v1166_v11 = vmul.f32 0.1, %v1150_v8  ;;  %vm1158_vm12 = vcmp.gt.f32.partialorder %v1150_v8, 0.0  ;;  %v1175_v15 = vsel %vm1159_vm13, %v1151_v10, %v1167_v13  ;;  %v2304_v10 = vld [vmem:[%s3557_s7 + $0x80] sm:$0xff] }
 0x203   : > { %2573 = vmatprep.mubr.msk.f32.mxu1 %vm2880_vm3, %v2879_v41  ;;  %2649 = vmatpush3.msra.mxu0 %v2295_v17 }
 0x204   : > { %v1174_v14 = vsel %vm1158_vm12, %v1150_v8, %v1166_v11  ;;  %2650 = vmatprep.subr.mxu0 %v2879_v41 }
 0x205   : > { %2611 = vmatmul.mubr.msk.f32.gmra.mxu0 %vm1193_vm6, %v1171_v4 }
 0x206   : > { %2574 = vmatmul.mubr.msk.f32.gmra.mxu1 %vm1193_vm6, %v1172_v9  ;;  %2613 = vmatprep.mubr.msk.f32.mxu0 %vm2880_vm3, %v2879_v41 }
 0x207   : > { %2576 = vmatprep.mubr.msk.f32.mxu1 %vm2880_vm3, %v2879_v41  ;;  %2651 = vmatpush3.msra.mxu0 %v2294_v18  ;;  %v2317_v18 = vld [vmem:[%s3557_s7 + $0xd8] sm:$0xff] }
 0x208   : > { %2666 = vmatprep.subr.mxu0 %v2879_v41 }
 0x209   : > { %2614 = vmatmul.mubr.msk.f32.gmra.mxu0 %vm1193_vm6, %v1172_v9 }
 0x20a   : > { %2577 = vmatmul.mubr.msk.f32.gmra.mxu1 %vm1193_vm6, %v1173_v12  ;;  %2616 = vmatprep.mubr.msk.f32.mxu0 %vm2880_vm3, %v2879_v41 }
 0x20b   : > { %2579 = vmatprep.mubr.msk.f32.mxu1 %vm2880_vm3, %v2879_v41 }
 0x20d   : > { %2617 = vmatmul.mubr.msk.f32.gmra.mxu0 %vm1193_vm6, %v1173_v12 }
 0x20e   : > { %2580 = vmatmul.mubr.msk.f32.gmra.mxu1 %vm1193_vm6, %v1174_v14  ;;  %2619 = vmatprep.mubr.msk.f32.mxu0 %vm2880_vm3, %v2879_v41 }
 0x20f   : > { %2582 = vmatprep.mubr.msk.f32.mxu1 %vm2880_vm3, %v2879_v41 }
 0x211   : > { %2620 = vmatmul.mubr.msk.f32.gmra.mxu0 %vm1193_vm6, %v1174_v14 }
 0x212   : > { %2583 = vmatmul.mubr.msk.f32.gmra.mxu1 %vm1193_vm6, %v1175_v15  ;;  %2652 = vmatprep.mubr.msk.f32.mxu0 %vm2880_vm3, %v2879_v41  ;;  %v2312_v15 = vld [vmem:[%s3557_s7 + $0xb8] sm:$0xff] }
 0x213   : > { %2630 = vmatprep.mubr.msk.f32.mxu1 %vm2880_vm3, %v2879_v41 }
 0x2b7   : > { %v1281_v19 = vpop.f32.mrf.mxu1 }
 0x2b9   : > { %v2566_v20 = vpop.f32.mrf.mxu1  ;;  %v1384_v21 = vpop.f32.mrf.mxu0 }
 0x2ba   : > { %v1385_v23 = vadd.f32 %v1384_v21, %v1281_v19  ;;  %v2311_v21 = vld [vmem:[%s3557_s7 + $0xb0] sm:$0xff] }
 0x2bb   : > { %v2603_v24 = vpop.f32.mrf.mxu0 }
 0x2bc   : > { %v1425_v25 = vadd.f32 %v3339_v22, %v1385_v23  ;;  %v2316_v24 = vld [vmem:[%s3557_s7 + $0xd0] sm:$0xff] }
 0x2bd   : > { %v1389_v26 = vpop.f32.mrf.mxu0 }
 0x2be   : > { %vm1432_vm14 = vcmp.gt.f32.partialorder %v1425_v25, 0.0  ;;  %v1439_v27 = vmul.f32 0.1, %v1425_v25  ;;  %v1286_v28 = vpop.f32.mrf.mxu1 }
 0x2bf   : > { %v1390_v29 = vadd.f32 %v1389_v26, %v1286_v28  ;;  %v2606_v30 = vpop.f32.mrf.mxu0  ;;  %v2310_v26 = vld [vmem:[%s3557_s7 + $0xa8] sm:$0xff] }
 0x2c0   : > { %v1446_v32 = vsel %vm1432_vm14, %v1425_v25, %v1439_v27  ;;  %v2569_v33 = vpop.f32.mrf.mxu1  ;;  %v2315_v28 = vld [vmem:[%s3557_s7 + $0xc8] sm:$0xff]  ;;  %v2314_v30 = vld [vmem:[%s3557_s7 + $0xc0] sm:$0xff] }
 0x2c1   : > { %v1426_v34 = vadd.f32 %v3339_v22, %v1390_v29  ;;  %v1394_v35 = vpop.f32.mrf.mxu0  ;;  %2631 = vmatmul.mubr.msk.f32.vlgmr.msra.gmra.mxu1 %vm781_vm4, %v1446_v32  ;;  %v2031_v33 = vld [vmem:[%s3559_s9 + $0x68] sm:$0xff] }
 0x2c2   : > { %v1291_v37 = vpop.f32.mrf.mxu1  ;;  %2634 = vmatpush3.msra.mxu1 %v2292_v31  ;;  %2641 = vmatprep.mubr.msk.f32.mxu1 %vm2880_vm3, %v2879_v41 }
 0x2c3   : > { %v1395_v38 = vadd.f32 %v1394_v35, %v1291_v37  ;;  %2635 = vmatprep.subr.mxu1 %v2879_v41  ;;  %v2609_v39 = vpop.f32.mrf.mxu0  ;;  %v1440_v42 = vmul.f32 0.1, %v1426_v34  ;;  %vm1433_vm15 = vcmp.gt.f32.partialorder %v1426_v34, 0.0  ;;  %v2029_v35 = vld [vmem:[%s3559_s9 + $0x58] sm:$0xff]  ;;  %v2027_v37 = vld [vmem:[%s3559_s9 + $0x48] sm:$0xff] }
 0x2c4   : > { %v2572_v43 = vpop.f32.mrf.mxu1  ;;  %2636 = vmatpush3.msra.mxu1 %v2291_v36  ;;  %v2028_v36 = vld [vmem:[%s3559_s9 + $0x50] sm:$0xff]  ;;  %v2025_v39 = vld [vmem:[%s3559_s9 + $0x38] sm:$0xff] }
 0x2c5   : > { %v1427_v45 = vadd.f32 %v3339_v22, %v1395_v38  ;;  %2637 = vmatprep.subr.mxu1 %v2879_v41  ;;  %v1399_v46 = vpop.f32.mrf.mxu0  ;;  %v1447_v54 = vsel %vm1433_vm15, %v1426_v34, %v1440_v42  ;;  %v2030_v34 = vld [vmem:[%s3559_s9 + $0x60] sm:$0xff]  ;;  %v2023_v42 = vld [vmem:[%s3559_s9 + $0x28] sm:$0xff] }
 0x2c6   : > { %v1296_v48 = vpop.f32.mrf.mxu1  ;;  %2638 = vmatpush3.msra.mxu1 %v2290_v40  ;;  %v2026_v38 = vld [vmem:[%s3559_s9 + $0x40] sm:$0xff]  ;;  %v2024_v40 = vld [vmem:[%s3559_s9 + $0x30] sm:$0xff] }
 0x2c7   : > { %vm1434_vm0 = vcmp.gt.f32.partialorder %v1427_v45, 0.0  ;;  %v1441_v49 = vmul.f32 0.1, %v1427_v45  ;;  %v1400_v50 = vadd.f32 %v1399_v46, %v1296_v48  ;;  %2639 = vmatprep.subr.mxu1 %v2879_v41  ;;  %v2612_v51 = vpop.f32.mrf.mxu0  ;;  %v2022_v43 = vld [vmem:[%s3559_s9 + $0x20] sm:$0xff]  ;;  %v2020_v46 = vld [vmem:[%s3559_s9 + $0x10] sm:$0xff] }
 0x2c8   : > { %v2575_v53 = vpop.f32.mrf.mxu1  ;;  %2640 = vmatpush3.msra.mxu1 %v2289_v47  ;;  %v2019_v47 = vld [vmem:[%s3559_s9 + $0x8] sm:$0xff]  ;;  %v2018_v48 = vld [vmem:[%s3559_s9] sm:$0xff] }
 0x2c9   : > { %v1448_v56 = vsel %vm1434_vm0, %v1427_v45, %v1441_v49  ;;  %v1428_v57 = vadd.f32 %v3339_v22, %v1400_v50  ;;  %2642 = vmatmul.mubr.msk.f32.vlgmr.msra.gmra.mxu1 %vm781_vm4, %v1447_v54  ;;  %2655 = vmatprep.subr.mxu1 %v2879_v41  ;;  %v1404_v44 = vpop.f32.mrf.mxu0  ;;  %v2021_v45 = vld [vmem:[%s3559_s9 + $0x18] sm:$0xff]  ;;  %v2288_v53 = vld [vmem:[%s3558_s8] ss:$0 sm:$0xff] }
 0x2ca   : > { %v1301_v59 = vpop.f32.mrf.mxu1  ;;  %2653 = vmatmul.mubr.msk.f32.vlgmr.msra.gmra.mxu0 %vm781_vm4, %v1448_v56  ;;  %2656 = vmatpush3.msra.mxu1 %v2302_v52 }
 0x2cb   : > { %v1405_v61 = vadd.f32 %v1404_v44, %v1301_v59  ;;  %2657 = vmatprep.subr.mxu1 %v2879_v41  ;;  %2667 = vmatpush3.msra.mxu0 %v2307_v55  ;;  %v2615_v62 = vpop.f32.mrf.mxu0  ;;  %v1442_v0 = vmul.f32 0.1, %v1428_v57  ;;  %vm1435_vm1 = vcmp.gt.f32.partialorder %v1428_v57, 0.0 }
 0x2cc   : > { %v2578_v1 = vpop.f32.mrf.mxu1  ;;  %2658 = vmatpush3.msra.mxu1 %v2301_v58  ;;  %2668 = vmatprep.subr.mxu0 %v2879_v41 }
 0x2cd   : > { %v1429_v3 = vadd.f32 %v3339_v22, %v1405_v61  ;;  %2659 = vmatprep.subr.mxu1 %v2879_v41  ;;  %2669 = vmatpush3.msra.mxu0 %v2306_v60  ;;  %v1409_v4 = vpop.f32.mrf.mxu0  ;;  %v1449_v12 = vsel %vm1435_vm1, %v1428_v57, %v1442_v0 }
 0x2ce   : > { %v1306_v6 = vpop.f32.mrf.mxu1  ;;  %2660 = vmatpush3.msra.mxu1 %v2300_v63  ;;  %2670 = vmatprep.subr.mxu0 %v2879_v41 }
 0x2cf   : > { %vm1436_vm2 = vcmp.gt.f32.partialorder %v1429_v3, 0.0  ;;  %v1443_v7 = vmul.f32 0.1, %v1429_v3  ;;  %v1410_v8 = vadd.f32 %v1409_v4, %v1306_v6  ;;  %2661 = vmatprep.subr.mxu1 %v2879_v41  ;;  %2671 = vmatpush3.msra.mxu0 %v2305_v2  ;;  %v2618_v9 = vpop.f32.mrf.mxu0 }
 0x2d0   : > { %v2581_v11 = vpop.f32.mrf.mxu1  ;;  %2662 = vmatpush3.msra.mxu1 %v2299_v5  ;;  %2663 = vmatprep.mubr.msk.f32.mxu1 %vm2880_vm3, %v2879_v41  ;;  %v2320_v9 = vld [vmem:[%s3560_s10] ss:$0 sm:$0xff] }
 0x2d1   : > { %2672 = vmatprep.subr.mxu0 %v2879_v41  ;;  %2664 = vmatmul.mubr.msk.f32.vlgmr.msra.gmra.mxu1 %vm781_vm4, %v1449_v12  ;;  %v1414_v13 = vpop.f32.mrf.mxu0  ;;  %v1450_v14 = vsel %vm1436_vm2, %v1429_v3, %v1443_v7  ;;  %v1430_v16 = vadd.f32 %v3339_v22, %v1410_v8 }
 0x2d2   : > { %2673 = vmatpush3.msra.mxu0 %v2304_v10  ;;  %2674 = vmatprep.mubr.msk.f32.mxu0 %vm2880_vm3, %v2879_v41  ;;  %v1311_v17 = vpop.f32.mrf.mxu1 }
 0x2d3   : > { %2677 = vmatprep.subr.mxu1 %v2879_v41  ;;  %v1415_v19 = vadd.f32 %v1414_v13, %v1311_v17  ;;  %2675 = vmatmul.mubr.msk.f32.vlgmr.msra.gmra.mxu0 %vm781_vm4, %v1450_v14  ;;  %v2621_v20 = vpop.f32.mrf.mxu0  ;;  %v1444_v27 = vmul.f32 0.1, %v1430_v16  ;;  %vm1437_vm5 = vcmp.gt.f32.partialorder %v1430_v16, 0.0 }
 0x2d4   : > { %2678 = vmatpush3.msra.mxu1 %v2312_v15  ;;  %2688 = vmatprep.subr.mxu0 %v2879_v41  ;;  %v2584_v23 = vpop.f32.mrf.mxu1 }
 0x2d5   : > { %v1431_v25 = vadd.f32 %v3339_v22, %v1415_v19  ;;  %2679 = vmatprep.subr.mxu1 %v2879_v41  ;;  %2689 = vmatpush3.msra.mxu0 %v2317_v18  ;;  %v2309_v22 = vld [vmem:[%s3557_s7 + $0xa0] sm:$0xff]  ;;  %v1451_v31 = vsel %vm1437_vm5, %v1430_v16, %v1444_v27 }
 0x2d6   : > { %2680 = vmatpush3.msra.mxu1 %v2311_v21  ;;  %2690 = vmatprep.subr.mxu0 %v2879_v41 }
 0x2d7   : > { %vm1438_vm6 = vcmp.gt.f32.partialorder %v1431_v25, 0.0  ;;  %v1445_v29 = vmul.f32 0.1, %v1431_v25  ;;  %2681 = vmatprep.subr.mxu1 %v2879_v41  ;;  %2691 = vmatpush3.msra.mxu0 %v2316_v24 }
 0x2d8   : > { %2682 = vmatpush3.msra.mxu1 %v2310_v26  ;;  %2692 = vmatprep.subr.mxu0 %v2879_v41 }
 0x2d9   : > { %2683 = vmatprep.subr.mxu1 %v2879_v41  ;;  %2693 = vmatpush3.msra.mxu0 %v2315_v28  ;;  %v1452_v32 = vsel %vm1438_vm6, %v1431_v25, %v1445_v29 }
 0x2da   : > { %2684 = vmatpush3.msra.mxu1 %v2309_v22  ;;  %2685 = vmatprep.mubr.msk.f32.mxu1 %vm2880_vm3, %v2879_v41 }
 0x2db   : > { %2694 = vmatprep.subr.mxu0 %v2879_v41  ;;  %2686 = vmatmul.mubr.msk.f32.vlgmr.msra.gmra.mxu1 %vm781_vm4, %v1451_v31 }
 0x2dc   : > { %2695 = vmatpush3.msra.mxu0 %v2314_v30  ;;  %2696 = vmatprep.mubr.msk.f32.mxu0 %vm2880_vm3, %v2879_v41 }
 0x2dd   : > { %2697 = vmatmul.mubr.msk.f32.vlgmr.msra.gmra.mxu0 %vm781_vm4, %v1452_v32  ;;  %2699 = vmatprep.subr.mxu1 %v2879_v41  ;;  %vm2039_vm4 = vcmask 916480  }
 0x2de   : > { %2727 = vmatprep.mubr.msk.f32.mxu1 %vm2880_vm3, %v2879_v41  ;;  %2700 = vmatpush3.msra.mxu1 %v2031_v33 }
 0x2df   : > { %2701 = vmatprep.subr.mxu1 %v2879_v41 }
 0x2e0   : > { %2702 = vmatpush3.msra.mxu1 %v2030_v34 }
 0x2e1   : > { %2703 = vmatprep.subr.mxu1 %v2879_v41 }
 0x2e2   : > { %2704 = vmatpush3.msra.mxu1 %v2029_v35 }
 0x2e3   : > { %2705 = vmatprep.subr.mxu1 %v2879_v41 }
 0x2e4   : > { %2706 = vmatpush3.msra.mxu1 %v2028_v36 }
 0x2e5   : > { %2707 = vmatprep.subr.mxu1 %v2879_v41 }
 0x2e6   : > { %2708 = vmatpush3.msra.mxu1 %v2027_v37 }
 0x2e7   : > { %2709 = vmatprep.subr.mxu1 %v2879_v41 }
 0x2e8   : > { %2710 = vmatpush3.msra.mxu1 %v2026_v38 }
 0x2e9   : > { %2711 = vmatprep.subr.mxu1 %v2879_v41 }
 0x2ea   : > { %2712 = vmatpush3.msra.mxu1 %v2025_v39 }
 0x2eb   : > { %2713 = vmatprep.subr.mxu1 %v2879_v41 }
 0x2ec   : > { %2714 = vmatpush3.msra.mxu1 %v2024_v40 }
 0x2ed   : > { %2715 = vmatprep.subr.mxu1 %v2879_v41 }
 0x2ee   : > { %2716 = vmatpush3.msra.mxu1 %v2023_v42 }
 0x2ef   : > { %2717 = vmatprep.subr.mxu1 %v2879_v41 }
 0x2f0   : > { %2718 = vmatpush3.msra.mxu1 %v2022_v43 }
 0x2f1   : > { %2719 = vmatprep.subr.mxu1 %v2879_v41 }
 0x2f2   : > { %2720 = vmatpush3.msra.mxu1 %v2021_v45 }
 0x2f3   : > { %2721 = vmatprep.subr.mxu1 %v2879_v41 }
 0x2f4   : > { %2722 = vmatpush3.msra.mxu1 %v2020_v46 }
 0x2f5   : > { %2723 = vmatprep.subr.mxu1 %v2879_v41 }
 0x2f6   : > { %2724 = vmatpush3.msra.mxu1 %v2019_v47 }
 0x2f7   : > { %2725 = vmatprep.subr.mxu1 %v2879_v41 }
 0x2f8   : > { %2726 = vmatpush3.msra.mxu1 %v2018_v48 }
 0x381   : > { %v1527_v49 = vpop.f32.mrf.mxu1 }
 0x382   : > { %v1537_v56 = vadd.f32 %v2288_v53, %v1527_v49 }
 0x383   : > { %v2632_v50 = vpop.f32.mrf.mxu1 }
 0x389   : > { %v1612_v51 = vpop.f32.mrf.mxu1 }
 0x38a   : > { %v1691_v52 = vpop.f32.mrf.mxu0  ;;  %v1616_v57 = vadd.f32 %v1612_v51, %v1537_v56 }
 0x38b   : > { %v2643_v54 = vpop.f32.mrf.mxu1 }
 0x38c   : > { %v2654_v55 = vpop.f32.mrf.mxu0  ;;  %v1695_v60 = vadd.f32 %v1691_v52, %v1616_v57 }
 0x391   : > { %v1770_v44 = vpop.f32.mrf.mxu1 }
 0x392   : > { %v1774_v62 = vadd.f32 %v1770_v44, %v1695_v60 }
 0x393   : > { %v1849_v58 = vpop.f32.mrf.mxu0  ;;  %v2665_v59 = vpop.f32.mrf.mxu1 }
 0x394   : > { %v1853_v41 = vadd.f32 %v1849_v58, %v1774_v62 }
 0x395   : > { %v2676_v61 = vpop.f32.mrf.mxu0 }
 0x39b   : > { %v1928_v63 = vpop.f32.mrf.mxu1 }
 0x39c   : > { %v1932_v0 = vadd.f32 %v1928_v63, %v1853_v41 }
 0x39d   : > { %v2007_v1 = vpop.f32.mrf.mxu0  ;;  %v2687_v2 = vpop.f32.mrf.mxu1 }
 0x39e   : > { %v2011_v3 = vadd.f32 %v2007_v1, %v1932_v0 }
 0x39f   : > { %v2698_v4 = vpop.f32.mrf.mxu0 }
 0x3a0   : > { %v2319_v5 = vmul.f32 -1.442695, %v2011_v3 }
 0x3a2   : > { %2782 = vpow2.f32 %v2319_v5 }
 0x3af   : > { %v2783_v6 = vpop.eup %2782 }
 0x3b0   : > { %v2015_v7 = vadd.f32 1.0, %v2783_v6 }
 0x3b2   : > { %2784 = vrcp.f32 %v2015_v7 }
 0x3bf   : > { %v2785_v8 = vpop.eup %2784 }
 0x3c0   : > { %2728 = vmatmul.mubr.msk.f32.vlgmr.msra.gmra.mxu1 %vm2039_vm4, %v2785_v8 }
 0x480   : > { %v2109_v10 = vpop.f32.mrf.mxu1 }
 0x481   : > { %v2110_v11 = vadd.f32 %v2320_v9, %v2109_v10 }
 0x482   : > { %v2729_v12 = vpop.f32.mrf.mxu1 }
 0x483   : > { %2113 = vst [vmem:[%s492_s12] sm:$0xff] %v2110_v11 }
 0x484   : > { %2825 = shalt.err (!%p2822_p2)
}
 0x485   : > { %s2826_s25 = scalar_lea.hbm %s3513_s16, 128  ;;  %s2830_s12 = scalar_lea.hbm %s3561_s11, 256 }
 0x486   : > { %p2827_p3 = scmp.ne.s32.totalorder %s3513_s16, %s2826_s25  ;;  %p2831_p8 = scmp.lt.s32.totalorder %s3513_s16, %s3561_s11 }
 0x487   : > { %p2832_p9 = scmp.lt.s32.totalorder %s2830_s12, %s2826_s25 }
 0x488   : > { %p2828_p4 = pnand %p2827_p3, %p3570_p10 }
 0x489   : > { %p2833_p5 = por %p2832_p9, %p2831_p8 }
 0x48a   : > { %p2829_p7 = pneg %p2828_p4 }
 0x48c   : > { %p2834_p11 = pnand %p2833_p5, %p2829_p7 }
 0x48e   : > { %2837 = shalt.err (!%p2834_p11)
}
 0x48f   : > { %2734 = dma.vmem_to_hbm [thread:$0]  (%p3570_p10), %s2129_s14, 128, %s3513_s16, %s2115_s26  }
 0x490 PF: > { %s2140_s0 = sand.u32 1, %s2864_s17   ;;  %p3571_p12 = scmp.ne.s32.totalorder %s3567_s29, 0 }
 0x491   : > { %s2141_s24 = scalar_lea.sflag [#allocation5], %s2140_s0 }
 0x492   : > { %p2741_p13 = pnand %p2208_p6, %p3571_p12 }
 0x494   : > { %p2742_p0 = pneg %p2741_p13 }
 0x496   : > { %2859 = dma.done.wait (%p2742_p0), %s2141_s24, 128  }
 0x497   : > { %2861 = vsyncadd (%p2742_p0), %s2141_s24, 4294967168  ;;  %s3572_s21 = sld [smem:[#allocation9_spill]]  ;;  %p22_p1 = scmp.ge.s32.totalorder %s2967_s23, 4  }
 0x498   : > { %s3573_s17 = smov %s2868_s18  ;;  %s3574_s18 = smov %s2872_s19 }
 0x499   : > { %s3576_s20 = smov %s2967_s23  ;;  %24 = sbr.rel (!%p22_p1) target bundleno = 6 (0x6), region = 156 }
 0x49d   : > { %s3575_s19 = smov %s3572_s21 }
 0x49e   :  { %2146 = vsyncpa [#allocation4], 1 }
 0x49f   :  { %2148 = vsyncpa [#allocation4 + $0x1], 1 }
 0x4a0   :  { %2149 = vsyncpa [#allocation5], 1 }
 0x4a1   :  { %2151 = vsyncpa [#allocation5 + $0x1], 1 }

</bundles_post_ra>
